<compile_context>
chip_gen: v7x
topology: tpu7x:2x2x1
jax: 0.10.0
libtpu: 0.0.40
codegen_flags: <defaults>
</compile_context>

<pallas_src>
import math
from functools import partial

import jax
import jax.numpy as jnp
from jax.experimental import pallas as pl
from jax.experimental.pallas import tpu as pltpu


# ----------------------------- config -----------------------------
CFG = dict(
    vocab_size=128,
    hidden_size=64,
    num_hidden_layers=2,
    num_attention_heads=2,
    max_position_embeddings=16,
)
LN_EPS = 1e-5


# ----------------------------- in-kernel helpers -----------------------------
def _layernorm(v, w, b):
    mu = jnp.mean(v, axis=-1, keepdims=True)
    var = jnp.mean((v - mu) ** 2, axis=-1, keepdims=True)
    return (v - mu) * jax.lax.rsqrt(var + LN_EPS) * w + b


def _gelu_tanh(x):
    c = math.sqrt(2.0 / math.pi)
    return 0.5 * x * (1.0 + jnp.tanh(c * (x + 0.044715 * x * x * x)))


# ----------------------------- fused Pallas kernel -----------------------------
def smollm2_kernel(n_layers, n_heads, head_dim,
                   x_ref,
                   ln1w_ref, ln1b_ref, wqkv_ref, bqkv_ref, wo_ref, bo_ref,
                   ln2w_ref, ln2b_ref, wfc_ref, bfc_ref, wpr_ref, bpr_ref,
                   lnfw_ref, lnfb_ref, wlm_ref,
                   out_ref):
    """One grid step = one batch element; all layers + head computed in-kernel."""
    x = x_ref[0]                                    # (T, H) f32
    T, H = x.shape
    scale = 1.0 / math.sqrt(head_dim)

    # causal mask built ONCE, reused by every layer (JAX does not CSE iotas).
    row = jax.lax.broadcasted_iota(jnp.int32, (T, T), 0)
    col = jax.lax.broadcasted_iota(jnp.int32, (T, T), 1)
    causal = (row >= col)[None]                     # (1, T, T)

    for l in range(n_layers):                       # static unroll (L = 2)
        # ---- causal multi-head self-attention (batched over heads) ----
        h = _layernorm(x, ln1w_ref[l], ln1b_ref[l])
        qkv = jnp.dot(h, wqkv_ref[l], preferred_element_type=jnp.float32) + bqkv_ref[l]

        def split_heads(m):                         # (T, H) -> (nh, T, hd)
            return m.reshape(T, n_heads, head_dim).transpose(1, 0, 2)

        q = split_heads(qkv[:, 0:H])
        k = split_heads(qkv[:, H:2 * H])
        v = split_heads(qkv[:, 2 * H:3 * H])

        s = jnp.einsum("hqd,hkd->hqk", q, k,
                       preferred_element_type=jnp.float32) * scale   # (nh, T, T)
        s = jnp.where(causal, s, -1e30)
        p = jnp.exp(s - jnp.max(s, axis=-1, keepdims=True))
        p = p * pl.reciprocal(jnp.sum(p, axis=-1, keepdims=True), approx=True)
        ctx = jnp.einsum("hqk,hkd->hqd", p, v,
                         preferred_element_type=jnp.float32)         # (nh, T, hd)
        attn = ctx.transpose(1, 0, 2).reshape(T, H)                  # (T, H)

        x = x + jnp.dot(attn, wo_ref[l], preferred_element_type=jnp.float32) + bo_ref[l]

        # ---- MLP ----
        h2 = _layernorm(x, ln2w_ref[l], ln2b_ref[l])
        f = jnp.dot(h2, wfc_ref[l], preferred_element_type=jnp.float32) + bfc_ref[l]
        f = _gelu_tanh(f)
        x = x + jnp.dot(f, wpr_ref[l], preferred_element_type=jnp.float32) + bpr_ref[l]

    # ---- final LN + lm_head (lane-dense output: V = 128) ----
    xf = _layernorm(x, lnfw_ref[...], lnfb_ref[...])
    out_ref[0] = jnp.dot(xf, wlm_ref[...], preferred_element_type=jnp.float32)


# ----------------------------- wrapper -----------------------------
_WEIGHT_KEYS = ("ln1_w", "ln1_b", "w_qkv", "b_qkv", "w_attn_proj", "b_attn_proj",
                "ln2_w", "ln2_b", "w_fc", "b_fc", "w_mlp_proj", "b_mlp_proj",
                "ln_f_w", "ln_f_b", "lm_head")


def _full_spec(a):
    nd = a.ndim
    return pl.BlockSpec(a.shape, lambda b, _nd=nd: (0,) * _nd)


def smollm2_forward(idx, params, cfg, targets=None):
    B, T = idx.shape
    H = cfg["hidden_size"]
    V = cfg["vocab_size"]
    L = cfg["num_hidden_layers"]
    nh = cfg["num_attention_heads"]
    hd = H // nh

    # embedding gathers are glue (plain JAX)
    pos = jnp.minimum(jnp.arange(T), cfg["max_position_embeddings"] - 1)
    x = (params["wte"][idx] + params["wpe"][pos][None, :, :]).astype(jnp.float32)

    weights = [params[k] for k in _WEIGHT_KEYS]

    logits = pl.pallas_call(
        partial(smollm2_kernel, L, nh, hd),
        out_shape=jax.ShapeDtypeStruct((B, T, V), jnp.float32),
        grid=(B,),
        in_specs=[pl.BlockSpec((1, T, H), lambda b: (b, 0, 0))]
                 + [_full_spec(w) for w in weights],
        out_specs=pl.BlockSpec((1, T, V), lambda b: (b, 0, 0)),
        compiler_params=pltpu.CompilerParams(dimension_semantics=("parallel",)),
    )(x, *weights)

    loss = None
    if targets is not None:
        # cross entropy with ignore_index=0 (plain JAX glue; not exercised here)
        logp = jax.nn.log_softmax(logits, axis=-1)
        tl = jnp.take_along_axis(logp, targets[..., None], axis=-1)[..., 0]
        mask = (targets != 0).astype(jnp.float32)
        loss = -(tl * mask).sum() / jnp.maximum(mask.sum(), 1.0)
    return logits, loss


# ----------------------------- deterministic param init -----------------------------
def init_params(key, cfg):
    H = cfg["hidden_size"]
    V = cfg["vocab_size"]
    L = cfg["num_hidden_layers"]
    P = cfg["max_position_embeddings"]
    std = 0.02
    std_proj = 0.02 / math.sqrt(2 * L)

    ks = jax.random.split(key, 7)
    nrm = lambda k, s: jax.random.normal(k, s, jnp.float32)
    params = dict(
        wte=std * nrm(ks[0], (V, H)),
        wpe=std * nrm(ks[1], (P, H)),
        ln_f_w=jnp.ones((1, H), jnp.float32),
        ln_f_b=jnp.zeros((1, H), jnp.float32),
        lm_head=std * nrm(ks[2], (H, V)),                     # stored as (in, out)
        # per-layer weights stacked on a leading L axis (kept VMEM-resident)
        ln1_w=jnp.ones((L, 1, H), jnp.float32),
        ln1_b=jnp.zeros((L, 1, H), jnp.float32),
        w_qkv=std * nrm(ks[3], (L, H, 3 * H)),
        b_qkv=jnp.zeros((L, 1, 3 * H), jnp.float32),
        w_attn_proj=std_proj * nrm(ks[4], (L, H, H)),
        b_attn_proj=jnp.zeros((L, 1, H), jnp.float32),
        ln2_w=jnp.ones((L, 1, H), jnp.float32),
        ln2_b=jnp.zeros((L, 1, H), jnp.float32),
        w_fc=std * nrm(ks[5], (L, H, 4 * H)),
        b_fc=jnp.zeros((L, 1, 4 * H), jnp.float32),
        w_mlp_proj=std_proj * nrm(ks[6], (L, 4 * H, H)),
        b_mlp_proj=jnp.zeros((L, 1, H), jnp.float32),
    )
    return params


# ----------------------------- pure-JAX reference (sanity check) -----------------------------
def _ref_forward(idx, params, cfg):
    B, T = idx.shape
    H = cfg["hidden_size"]
    nh = cfg["num_attention_heads"]
    hd = H // nh
    L = cfg["num_hidden_layers"]
    pos = jnp.minimum(jnp.arange(T), cfg["max_position_embeddings"] - 1)
    x = params["wte"][idx] + params["wpe"][pos][None, :, :]

    def ln(v, w, b):
        mu = v.mean(-1, keepdims=True)
        var = ((v - mu) ** 2).mean(-1, keepdims=True)
        return (v - mu) * jax.lax.rsqrt(var + LN_EPS) * w + b

    mask = jnp.tril(jnp.ones((T, T), bool))
    for l in range(L):
        h = ln(x, params["ln1_w"][l], params["ln1_b"][l])
        qkv = h @ params["w_qkv"][l] + params["b_qkv"][l]
        q, k, v = jnp.split(qkv, 3, axis=-1)
        q = q.reshape(B, T, nh, hd).transpose(0, 2, 1, 3)
        k = k.reshape(B, T, nh, hd).transpose(0, 2, 1, 3)
        v = v.reshape(B, T, nh, hd).transpose(0, 2, 1, 3)
        s = jnp.einsum("bhqd,bhkd->bhqk", q, k) / math.sqrt(hd)
        s = jnp.where(mask, s, -1e30)
        p = jax.nn.softmax(s, axis=-1)
        a = jnp.einsum("bhqk,bhkd->bhqd", p, v).transpose(0, 2, 1, 3).reshape(B, T, H)
        x = x + a @ params["w_attn_proj"][l] + params["b_attn_proj"][l]
        h2 = ln(x, params["ln2_w"][l], params["ln2_b"][l])
        f = _gelu_tanh(h2 @ params["w_fc"][l] + params["b_fc"][l])
        x = x + f @ params["w_mlp_proj"][l] + params["b_mlp_proj"][l]
    x = ln(x, params["ln_f_w"], params["ln_f_b"])
    return x @ params["lm_head"]


# ----------------------------- main -----------------------------
if __name__ == "__main__":
    key = jax.random.PRNGKey(0)
    pkey, dkey = jax.random.split(key)
    params = init_params(pkey, CFG)

    B, T = 2, 8
    idx = jax.random.randint(dkey, (B, T), 0, CFG["vocab_size"], dtype=jnp.int32)

    logits, loss = smollm2_forward(idx, params, CFG, targets=None)
    logits = jax.block_until_ready(logits)

    assert logits.shape == (B, T, CFG["vocab_size"])
    assert bool(jnp.all(jnp.isfinite(logits)))

    ref = _ref_forward(idx, params, CFG)
    max_err = float(jnp.max(jnp.abs(logits - ref)))
    assert bool(jnp.allclose(logits, ref, atol=5e-3, rtol=5e-2)), max_err

    print("KERNEL_OK")
</pallas_src>

<mosaic_0001>
module attributes {stable_mosaic.version = 11 : i64} {
  func.func @smollm2_kernel(%arg0: i32, %arg1: memref<1x8x64xf32, #tpu.memory_space<vmem>>, %arg2: memref<2x1x64xf32, #tpu.memory_space<vmem>>, %arg3: memref<2x1x64xf32, #tpu.memory_space<vmem>>, %arg4: memref<2x64x192xf32, #tpu.memory_space<vmem>>, %arg5: memref<2x1x192xf32, #tpu.memory_space<vmem>>, %arg6: memref<2x64x64xf32, #tpu.memory_space<vmem>>, %arg7: memref<2x1x64xf32, #tpu.memory_space<vmem>>, %arg8: memref<2x1x64xf32, #tpu.memory_space<vmem>>, %arg9: memref<2x1x64xf32, #tpu.memory_space<vmem>>, %arg10: memref<2x64x256xf32, #tpu.memory_space<vmem>>, %arg11: memref<2x1x256xf32, #tpu.memory_space<vmem>>, %arg12: memref<2x256x64xf32, #tpu.memory_space<vmem>>, %arg13: memref<2x1x64xf32, #tpu.memory_space<vmem>>, %arg14: memref<1x64xf32, #tpu.memory_space<vmem>>, %arg15: memref<1x64xf32, #tpu.memory_space<vmem>>, %arg16: memref<64x128xf32, #tpu.memory_space<vmem>>, %arg17: memref<1x8x128xf32, #tpu.memory_space<vmem>>) attributes {dimension_semantics = [#tpu.dimension_semantics<parallel>], iteration_bounds = array<i64: 2>, scalar_prefetch = 0 : i64, scratch_operands = 0 : i64, tpu.core_type = #tpu.core_type<tc>, window_params = [{transform_indices = @transform_0, window_bounds = array<i64: 1, 8, 64>}, {pipeline_mode = #tpu.pipeline_mode<synchronous>, transform_indices = @transform_1, window_bounds = array<i64: 2, 1, 64>}, {pipeline_mode = #tpu.pipeline_mode<synchronous>, transform_indices = @transform_2, window_bounds = array<i64: 2, 1, 64>}, {pipeline_mode = #tpu.pipeline_mode<synchronous>, transform_indices = @transform_3, window_bounds = array<i64: 2, 64, 192>}, {pipeline_mode = #tpu.pipeline_mode<synchronous>, transform_indices = @transform_4, window_bounds = array<i64: 2, 1, 192>}, {pipeline_mode = #tpu.pipeline_mode<synchronous>, transform_indices = @transform_5, window_bounds = array<i64: 2, 64, 64>}, {pipeline_mode = #tpu.pipeline_mode<synchronous>, transform_indices = @transform_6, window_bounds = array<i64: 2, 1, 64>}, {pipeline_mode = #tpu.pipeline_mode<synchronous>, transform_indices = @transform_7, window_bounds = array<i64: 2, 1, 64>}, {pipeline_mode = #tpu.pipeline_mode<synchronous>, transform_indices = @transform_8, window_bounds = array<i64: 2, 1, 64>}, {pipeline_mode = #tpu.pipeline_mode<synchronous>, transform_indices = @transform_9, window_bounds = array<i64: 2, 64, 256>}, {pipeline_mode = #tpu.pipeline_mode<synchronous>, transform_indices = @transform_10, window_bounds = array<i64: 2, 1, 256>}, {pipeline_mode = #tpu.pipeline_mode<synchronous>, transform_indices = @transform_11, window_bounds = array<i64: 2, 256, 64>}, {pipeline_mode = #tpu.pipeline_mode<synchronous>, transform_indices = @transform_12, window_bounds = array<i64: 2, 1, 64>}, {pipeline_mode = #tpu.pipeline_mode<synchronous>, transform_indices = @transform_13, window_bounds = array<i64: 1, 64>}, {pipeline_mode = #tpu.pipeline_mode<synchronous>, transform_indices = @transform_14, window_bounds = array<i64: 1, 64>}, {pipeline_mode = #tpu.pipeline_mode<synchronous>, transform_indices = @transform_15, window_bounds = array<i64: 64, 128>}, {transform_indices = @transform_16, window_bounds = array<i64: 1, 8, 128>}]} {
    %c0 = arith.constant 0 : index
    %c0_0 = arith.constant 0 : index
    %c0_1 = arith.constant 0 : index
    %0 = vector.load %arg1[%c0, %c0_0, %c0_1] : memref<1x8x64xf32, #tpu.memory_space<vmem>>, vector<1x8x64xf32>
    %1 = vector.shape_cast %0 : vector<1x8x64xf32> to vector<8x64xf32>
    %2 = tpu.iota {dimensions = array<i32: 0>} : vector<8x8xi32>
    %3 = tpu.iota {dimensions = array<i32: 1>} : vector<8x8xi32>
    %4 = arith.cmpi sge, %2, %3 : vector<8x8xi32>
    %5 = vector.shape_cast %4 : vector<8x8xi1> to vector<1x8x8xi1>
    %c0_2 = arith.constant 0 : index
    %c0_3 = arith.constant 0 : index
    %c0_4 = arith.constant 0 : index
    %6 = vector.load %arg2[%c0_2, %c0_3, %c0_4] : memref<2x1x64xf32, #tpu.memory_space<vmem>>, vector<1x1x64xf32>
    %7 = vector.shape_cast %6 : vector<1x1x64xf32> to vector<1x64xf32>
    %c0_5 = arith.constant 0 : index
    %c0_6 = arith.constant 0 : index
    %c0_7 = arith.constant 0 : index
    %8 = vector.load %arg3[%c0_5, %c0_6, %c0_7] : memref<2x1x64xf32, #tpu.memory_space<vmem>>, vector<1x1x64xf32>
    %9 = vector.shape_cast %8 : vector<1x1x64xf32> to vector<1x64xf32>
    %cst = arith.constant dense<0.000000e+00> : vector<8xf32>
    %10 = vector.multi_reduction <add>, %1, %cst [1] : vector<8x64xf32> to vector<8xf32>
    %11 = vector.shape_cast %10 : vector<8xf32> to vector<8x1xf32>
    %cst_8 = arith.constant 6.400000e+01 : f32
    %12 = vector.broadcast %cst_8 : f32 to vector<8x1xf32>
    %13 = arith.divf %11, %12 : vector<8x1xf32>
    %14 = vector.broadcast %13 : vector<8x1xf32> to vector<8x64xf32>
    %15 = arith.subf %1, %14 : vector<8x64xf32>
    %16 = arith.mulf %15, %15 : vector<8x64xf32>
    %cst_9 = arith.constant dense<0.000000e+00> : vector<8xf32>
    %17 = vector.multi_reduction <add>, %16, %cst_9 [1] : vector<8x64xf32> to vector<8xf32>
    %18 = vector.shape_cast %17 : vector<8xf32> to vector<8x1xf32>
    %cst_10 = arith.constant 6.400000e+01 : f32
    %19 = vector.broadcast %cst_10 : f32 to vector<8x1xf32>
    %20 = arith.divf %18, %19 : vector<8x1xf32>
    %21 = vector.broadcast %13 : vector<8x1xf32> to vector<8x64xf32>
    %22 = arith.subf %1, %21 : vector<8x64xf32>
    %cst_11 = arith.constant 9.99999974E-6 : f32
    %23 = vector.broadcast %cst_11 : f32 to vector<8x1xf32>
    %24 = arith.addf %20, %23 : vector<8x1xf32>
    %25 = math.rsqrt %24 : vector<8x1xf32>
    %26 = vector.broadcast %25 : vector<8x1xf32> to vector<8x64xf32>
    %27 = arith.mulf %22, %26 : vector<8x64xf32>
    %28 = vector.broadcast %7 : vector<1x64xf32> to vector<8x64xf32>
    %29 = arith.mulf %27, %28 : vector<8x64xf32>
    %30 = vector.broadcast %9 : vector<1x64xf32> to vector<8x64xf32>
    %31 = arith.addf %29, %30 : vector<8x64xf32>
    %c0_12 = arith.constant 0 : index
    %c0_13 = arith.constant 0 : index
    %c0_14 = arith.constant 0 : index
    %32 = vector.load %arg4[%c0_12, %c0_13, %c0_14] : memref<2x64x192xf32, #tpu.memory_space<vmem>>, vector<1x64x192xf32>
    %33 = vector.shape_cast %32 : vector<1x64x192xf32> to vector<64x192xf32>
    %cst_15 = arith.constant dense<0.000000e+00> : vector<8x192xf32>
    %34 = tpu.matmul %31, %33, %cst_15 {dimension_numbers = #tpu.dot_dimension_numbers<[1], [0], [0], [1], [0, 0, 1, 1], [], []>} : vector<8x64xf32>, vector<64x192xf32>, vector<8x192xf32> -> vector<8x192xf32>
    %c0_16 = arith.constant 0 : index
    %c0_17 = arith.constant 0 : index
    %c0_18 = arith.constant 0 : index
    %35 = vector.load %arg5[%c0_16, %c0_17, %c0_18] : memref<2x1x192xf32, #tpu.memory_space<vmem>>, vector<1x1x192xf32>
    %36 = vector.shape_cast %35 : vector<1x1x192xf32> to vector<1x192xf32>
    %37 = vector.broadcast %36 : vector<1x192xf32> to vector<8x192xf32>
    %38 = arith.addf %34, %37 : vector<8x192xf32>
    %39 = vector.extract_strided_slice %38 {offsets = [0, 0], sizes = [8, 64], strides = [1, 1]} : vector<8x192xf32> to vector<8x64xf32>
    %40 = vector.shape_cast %39 : vector<8x64xf32> to vector<8x2x32xf32>
    %41 = tpu.transpose %40, [1, 0, 2] : vector<8x2x32xf32> -> vector<2x8x32xf32>
    %42 = vector.extract_strided_slice %38 {offsets = [0, 64], sizes = [8, 64], strides = [1, 1]} : vector<8x192xf32> to vector<8x64xf32>
    %43 = vector.shape_cast %42 : vector<8x64xf32> to vector<8x2x32xf32>
    %44 = tpu.transpose %43, [1, 0, 2] : vector<8x2x32xf32> -> vector<2x8x32xf32>
    %45 = vector.extract_strided_slice %38 {offsets = [0, 128], sizes = [8, 64], strides = [1, 1]} : vector<8x192xf32> to vector<8x64xf32>
    %46 = vector.shape_cast %45 : vector<8x64xf32> to vector<8x2x32xf32>
    %47 = tpu.transpose %46, [1, 0, 2] : vector<8x2x32xf32> -> vector<2x8x32xf32>
    "tpu.trace_start"() <{level = 10 : i32, message = "hqd,hkd->hqk"}> : () -> ()
    %cst_19 = arith.constant dense<0.000000e+00> : vector<2x8x8xf32>
    %48 = tpu.matmul %41, %44, %cst_19 {dimension_numbers = #tpu.dot_dimension_numbers<[2], [2], [1], [1], [0, 0, 0, 1, 1, 1], [0], [0]>} : vector<2x8x32xf32>, vector<2x8x32xf32>, vector<2x8x8xf32> -> vector<2x8x8xf32>
    "tpu.trace_stop"() : () -> ()
    %cst_20 = arith.constant 0.176776692 : f32
    %49 = vector.broadcast %cst_20 : f32 to vector<2x8x8xf32>
    %50 = arith.mulf %48, %49 : vector<2x8x8xf32>
    %cst_21 = arith.constant -1.000000e+30 : f32
    %51 = vector.shape_cast %5 : vector<1x8x8xi1> to vector<1x8x8xi1>
    %52 = vector.broadcast %51 : vector<1x8x8xi1> to vector<2x8x8xi1>
    %53 = vector.broadcast %cst_21 : f32 to vector<2x8x8xf32>
    %54 = arith.select %52, %50, %53 : vector<2x8x8xi1>, vector<2x8x8xf32>
    %cst_22 = arith.constant dense<0xFF800000> : vector<2x8xf32>
    %55 = vector.multi_reduction <maximumf>, %54, %cst_22 [2] : vector<2x8x8xf32> to vector<2x8xf32>
    %56 = vector.shape_cast %55 : vector<2x8xf32> to vector<2x8x1xf32>
    %57 = vector.broadcast %56 : vector<2x8x1xf32> to vector<2x8x8xf32>
    %58 = arith.subf %54, %57 : vector<2x8x8xf32>
    %59 = math.exp %58 : vector<2x8x8xf32>
    %cst_23 = arith.constant dense<0.000000e+00> : vector<2x8xf32>
    %60 = vector.multi_reduction <add>, %59, %cst_23 [2] : vector<2x8x8xf32> to vector<2x8xf32>
    %61 = vector.shape_cast %60 : vector<2x8xf32> to vector<2x8x1xf32>
    %62 = tpu.reciprocal %61 {approx = true} : vector<2x8x1xf32> -> vector<2x8x1xf32>
    %63 = vector.broadcast %62 : vector<2x8x1xf32> to vector<2x8x8xf32>
    %64 = arith.mulf %59, %63 : vector<2x8x8xf32>
    "tpu.trace_start"() <{level = 10 : i32, message = "hqk,hkd->hqd"}> : () -> ()
    %cst_24 = arith.constant dense<0.000000e+00> : vector<2x8x32xf32>
    %65 = tpu.matmul %64, %47, %cst_24 {dimension_numbers = #tpu.dot_dimension_numbers<[2], [1], [1], [2], [0, 0, 0, 1, 1, 2], [0], [0]>} : vector<2x8x8xf32>, vector<2x8x32xf32>, vector<2x8x32xf32> -> vector<2x8x32xf32>
    "tpu.trace_stop"() : () -> ()
    %66 = tpu.transpose %65, [1, 0, 2] : vector<2x8x32xf32> -> vector<8x2x32xf32>
    %67 = vector.shape_cast %66 : vector<8x2x32xf32> to vector<8x64xf32>
    %c0_25 = arith.constant 0 : index
    %c0_26 = arith.constant 0 : index
    %c0_27 = arith.constant 0 : index
    %68 = vector.load %arg6[%c0_25, %c0_26, %c0_27] : memref<2x64x64xf32, #tpu.memory_space<vmem>>, vector<1x64x64xf32>
    %69 = vector.shape_cast %68 : vector<1x64x64xf32> to vector<64x64xf32>
    %cst_28 = arith.constant dense<0.000000e+00> : vector<8x64xf32>
    %70 = tpu.matmul %67, %69, %cst_28 {dimension_numbers = #tpu.dot_dimension_numbers<[1], [0], [0], [1], [0, 0, 1, 1], [], []>} : vector<8x64xf32>, vector<64x64xf32>, vector<8x64xf32> -> vector<8x64xf32>
    %71 = arith.addf %1, %70 : vector<8x64xf32>
    %c0_29 = arith.constant 0 : index
    %c0_30 = arith.constant 0 : index
    %c0_31 = arith.constant 0 : index
    %72 = vector.load %arg7[%c0_29, %c0_30, %c0_31] : memref<2x1x64xf32, #tpu.memory_space<vmem>>, vector<1x1x64xf32>
    %73 = vector.shape_cast %72 : vector<1x1x64xf32> to vector<1x64xf32>
    %74 = vector.broadcast %73 : vector<1x64xf32> to vector<8x64xf32>
    %75 = arith.addf %71, %74 : vector<8x64xf32>
    %c0_32 = arith.constant 0 : index
    %c0_33 = arith.constant 0 : index
    %c0_34 = arith.constant 0 : index
    %76 = vector.load %arg8[%c0_32, %c0_33, %c0_34] : memref<2x1x64xf32, #tpu.memory_space<vmem>>, vector<1x1x64xf32>
    %77 = vector.shape_cast %76 : vector<1x1x64xf32> to vector<1x64xf32>
    %c0_35 = arith.constant 0 : index
    %c0_36 = arith.constant 0 : index
    %c0_37 = arith.constant 0 : index
    %78 = vector.load %arg9[%c0_35, %c0_36, %c0_37] : memref<2x1x64xf32, #tpu.memory_space<vmem>>, vector<1x1x64xf32>
    %79 = vector.shape_cast %78 : vector<1x1x64xf32> to vector<1x64xf32>
    %cst_38 = arith.constant dense<0.000000e+00> : vector<8xf32>
    %80 = vector.multi_reduction <add>, %75, %cst_38 [1] : vector<8x64xf32> to vector<8xf32>
    %81 = vector.shape_cast %80 : vector<8xf32> to vector<8x1xf32>
    %cst_39 = arith.constant 6.400000e+01 : f32
    %82 = vector.broadcast %cst_39 : f32 to vector<8x1xf32>
    %83 = arith.divf %81, %82 : vector<8x1xf32>
    %84 = vector.broadcast %83 : vector<8x1xf32> to vector<8x64xf32>
    %85 = arith.subf %75, %84 : vector<8x64xf32>
    %86 = arith.mulf %85, %85 : vector<8x64xf32>
    %cst_40 = arith.constant dense<0.000000e+00> : vector<8xf32>
    %87 = vector.multi_reduction <add>, %86, %cst_40 [1] : vector<8x64xf32> to vector<8xf32>
    %88 = vector.shape_cast %87 : vector<8xf32> to vector<8x1xf32>
    %cst_41 = arith.constant 6.400000e+01 : f32
    %89 = vector.broadcast %cst_41 : f32 to vector<8x1xf32>
    %90 = arith.divf %88, %89 : vector<8x1xf32>
    %91 = vector.broadcast %83 : vector<8x1xf32> to vector<8x64xf32>
    %92 = arith.subf %75, %91 : vector<8x64xf32>
    %cst_42 = arith.constant 9.99999974E-6 : f32
    %93 = vector.broadcast %cst_42 : f32 to vector<8x1xf32>
    %94 = arith.addf %90, %93 : vector<8x1xf32>
    %95 = math.rsqrt %94 : vector<8x1xf32>
    %96 = vector.broadcast %95 : vector<8x1xf32> to vector<8x64xf32>
    %97 = arith.mulf %92, %96 : vector<8x64xf32>
    %98 = vector.broadcast %77 : vector<1x64xf32> to vector<8x64xf32>
    %99 = arith.mulf %97, %98 : vector<8x64xf32>
    %100 = vector.broadcast %79 : vector<1x64xf32> to vector<8x64xf32>
    %101 = arith.addf %99, %100 : vector<8x64xf32>
    %c0_43 = arith.constant 0 : index
    %c0_44 = arith.constant 0 : index
    %c0_45 = arith.constant 0 : index
    %102 = vector.load %arg10[%c0_43, %c0_44, %c0_45] : memref<2x64x256xf32, #tpu.memory_space<vmem>>, vector<1x64x256xf32>
    %103 = vector.shape_cast %102 : vector<1x64x256xf32> to vector<64x256xf32>
    %cst_46 = arith.constant dense<0.000000e+00> : vector<8x256xf32>
    %104 = tpu.matmul %101, %103, %cst_46 {dimension_numbers = #tpu.dot_dimension_numbers<[1], [0], [0], [1], [0, 0, 1, 1], [], []>} : vector<8x64xf32>, vector<64x256xf32>, vector<8x256xf32> -> vector<8x256xf32>
    %c0_47 = arith.constant 0 : index
    %c0_48 = arith.constant 0 : index
    %c0_49 = arith.constant 0 : index
    %105 = vector.load %arg11[%c0_47, %c0_48, %c0_49] : memref<2x1x256xf32, #tpu.memory_space<vmem>>, vector<1x1x256xf32>
    %106 = vector.shape_cast %105 : vector<1x1x256xf32> to vector<1x256xf32>
    %107 = vector.broadcast %106 : vector<1x256xf32> to vector<8x256xf32>
    %108 = arith.addf %104, %107 : vector<8x256xf32>
    %cst_50 = arith.constant 5.000000e-01 : f32
    %109 = vector.broadcast %cst_50 : f32 to vector<8x256xf32>
    %110 = arith.mulf %109, %108 : vector<8x256xf32>
    %cst_51 = arith.constant 4.471500e-02 : f32
    %111 = vector.broadcast %cst_51 : f32 to vector<8x256xf32>
    %112 = arith.mulf %111, %108 : vector<8x256xf32>
    %113 = arith.mulf %112, %108 : vector<8x256xf32>
    %114 = arith.mulf %113, %108 : vector<8x256xf32>
    %115 = arith.addf %108, %114 : vector<8x256xf32>
    %cst_52 = arith.constant 0.797884583 : f32
    %116 = vector.broadcast %cst_52 : f32 to vector<8x256xf32>
    %117 = arith.mulf %116, %115 : vector<8x256xf32>
    %118 = math.tanh %117 : vector<8x256xf32>
    %cst_53 = arith.constant 1.000000e+00 : f32
    %119 = vector.broadcast %cst_53 : f32 to vector<8x256xf32>
    %120 = arith.addf %119, %118 : vector<8x256xf32>
    %121 = arith.mulf %110, %120 : vector<8x256xf32>
    %c0_54 = arith.constant 0 : index
    %c0_55 = arith.constant 0 : index
    %c0_56 = arith.constant 0 : index
    %122 = vector.load %arg12[%c0_54, %c0_55, %c0_56] : memref<2x256x64xf32, #tpu.memory_space<vmem>>, vector<1x256x64xf32>
    %123 = vector.shape_cast %122 : vector<1x256x64xf32> to vector<256x64xf32>
    %cst_57 = arith.constant dense<0.000000e+00> : vector<8x64xf32>
    %124 = tpu.matmul %121, %123, %cst_57 {dimension_numbers = #tpu.dot_dimension_numbers<[1], [0], [0], [1], [0, 0, 1, 1], [], []>} : vector<8x256xf32>, vector<256x64xf32>, vector<8x64xf32> -> vector<8x64xf32>
    %125 = arith.addf %75, %124 : vector<8x64xf32>
    %c0_58 = arith.constant 0 : index
    %c0_59 = arith.constant 0 : index
    %c0_60 = arith.constant 0 : index
    %126 = vector.load %arg13[%c0_58, %c0_59, %c0_60] : memref<2x1x64xf32, #tpu.memory_space<vmem>>, vector<1x1x64xf32>
    %127 = vector.shape_cast %126 : vector<1x1x64xf32> to vector<1x64xf32>
    %128 = vector.broadcast %127 : vector<1x64xf32> to vector<8x64xf32>
    %129 = arith.addf %125, %128 : vector<8x64xf32>
    %c1 = arith.constant 1 : index
    %c0_61 = arith.constant 0 : index
    %c0_62 = arith.constant 0 : index
    %130 = vector.load %arg2[%c1, %c0_61, %c0_62] : memref<2x1x64xf32, #tpu.memory_space<vmem>>, vector<1x1x64xf32>
    %131 = vector.shape_cast %130 : vector<1x1x64xf32> to vector<1x64xf32>
    %c1_63 = arith.constant 1 : index
    %c0_64 = arith.constant 0 : index
    %c0_65 = arith.constant 0 : index
    %132 = vector.load %arg3[%c1_63, %c0_64, %c0_65] : memref<2x1x64xf32, #tpu.memory_space<vmem>>, vector<1x1x64xf32>
    %133 = vector.shape_cast %132 : vector<1x1x64xf32> to vector<1x64xf32>
    %cst_66 = arith.constant dense<0.000000e+00> : vector<8xf32>
    %134 = vector.multi_reduction <add>, %129, %cst_66 [1] : vector<8x64xf32> to vector<8xf32>
    %135 = vector.shape_cast %134 : vector<8xf32> to vector<8x1xf32>
    %cst_67 = arith.constant 6.400000e+01 : f32
    %136 = vector.broadcast %cst_67 : f32 to vector<8x1xf32>
    %137 = arith.divf %135, %136 : vector<8x1xf32>
    %138 = vector.broadcast %137 : vector<8x1xf32> to vector<8x64xf32>
    %139 = arith.subf %129, %138 : vector<8x64xf32>
    %140 = arith.mulf %139, %139 : vector<8x64xf32>
    %cst_68 = arith.constant dense<0.000000e+00> : vector<8xf32>
    %141 = vector.multi_reduction <add>, %140, %cst_68 [1] : vector<8x64xf32> to vector<8xf32>
    %142 = vector.shape_cast %141 : vector<8xf32> to vector<8x1xf32>
    %cst_69 = arith.constant 6.400000e+01 : f32
    %143 = vector.broadcast %cst_69 : f32 to vector<8x1xf32>
    %144 = arith.divf %142, %143 : vector<8x1xf32>
    %145 = vector.broadcast %137 : vector<8x1xf32> to vector<8x64xf32>
    %146 = arith.subf %129, %145 : vector<8x64xf32>
    %cst_70 = arith.constant 9.99999974E-6 : f32
    %147 = vector.broadcast %cst_70 : f32 to vector<8x1xf32>
    %148 = arith.addf %144, %147 : vector<8x1xf32>
    %149 = math.rsqrt %148 : vector<8x1xf32>
    %150 = vector.broadcast %149 : vector<8x1xf32> to vector<8x64xf32>
    %151 = arith.mulf %146, %150 : vector<8x64xf32>
    %152 = vector.broadcast %131 : vector<1x64xf32> to vector<8x64xf32>
    %153 = arith.mulf %151, %152 : vector<8x64xf32>
    %154 = vector.broadcast %133 : vector<1x64xf32> to vector<8x64xf32>
    %155 = arith.addf %153, %154 : vector<8x64xf32>
    %c1_71 = arith.constant 1 : index
    %c0_72 = arith.constant 0 : index
    %c0_73 = arith.constant 0 : index
    %156 = vector.load %arg4[%c1_71, %c0_72, %c0_73] : memref<2x64x192xf32, #tpu.memory_space<vmem>>, vector<1x64x192xf32>
    %157 = vector.shape_cast %156 : vector<1x64x192xf32> to vector<64x192xf32>
    %cst_74 = arith.constant dense<0.000000e+00> : vector<8x192xf32>
    %158 = tpu.matmul %155, %157, %cst_74 {dimension_numbers = #tpu.dot_dimension_numbers<[1], [0], [0], [1], [0, 0, 1, 1], [], []>} : vector<8x64xf32>, vector<64x192xf32>, vector<8x192xf32> -> vector<8x192xf32>
    %c1_75 = arith.constant 1 : index
    %c0_76 = arith.constant 0 : index
    %c0_77 = arith.constant 0 : index
    %159 = vector.load %arg5[%c1_75, %c0_76, %c0_77] : memref<2x1x192xf32, #tpu.memory_space<vmem>>, vector<1x1x192xf32>
    %160 = vector.shape_cast %159 : vector<1x1x192xf32> to vector<1x192xf32>
    %161 = vector.broadcast %160 : vector<1x192xf32> to vector<8x192xf32>
    %162 = arith.addf %158, %161 : vector<8x192xf32>
    %163 = vector.extract_strided_slice %162 {offsets = [0, 0], sizes = [8, 64], strides = [1, 1]} : vector<8x192xf32> to vector<8x64xf32>
    %164 = vector.shape_cast %163 : vector<8x64xf32> to vector<8x2x32xf32>
    %165 = tpu.transpose %164, [1, 0, 2] : vector<8x2x32xf32> -> vector<2x8x32xf32>
    %166 = vector.extract_strided_slice %162 {offsets = [0, 64], sizes = [8, 64], strides = [1, 1]} : vector<8x192xf32> to vector<8x64xf32>
    %167 = vector.shape_cast %166 : vector<8x64xf32> to vector<8x2x32xf32>
    %168 = tpu.transpose %167, [1, 0, 2] : vector<8x2x32xf32> -> vector<2x8x32xf32>
    %169 = vector.extract_strided_slice %162 {offsets = [0, 128], sizes = [8, 64], strides = [1, 1]} : vector<8x192xf32> to vector<8x64xf32>
    %170 = vector.shape_cast %169 : vector<8x64xf32> to vector<8x2x32xf32>
    %171 = tpu.transpose %170, [1, 0, 2] : vector<8x2x32xf32> -> vector<2x8x32xf32>
    "tpu.trace_start"() <{level = 10 : i32, message = "hqd,hkd->hqk"}> : () -> ()
    %cst_78 = arith.constant dense<0.000000e+00> : vector<2x8x8xf32>
    %172 = tpu.matmul %165, %168, %cst_78 {dimension_numbers = #tpu.dot_dimension_numbers<[2], [2], [1], [1], [0, 0, 0, 1, 1, 1], [0], [0]>} : vector<2x8x32xf32>, vector<2x8x32xf32>, vector<2x8x8xf32> -> vector<2x8x8xf32>
    "tpu.trace_stop"() : () -> ()
    %cst_79 = arith.constant 0.176776692 : f32
    %173 = vector.broadcast %cst_79 : f32 to vector<2x8x8xf32>
    %174 = arith.mulf %172, %173 : vector<2x8x8xf32>
    %cst_80 = arith.constant -1.000000e+30 : f32
    %175 = vector.shape_cast %5 : vector<1x8x8xi1> to vector<1x8x8xi1>
    %176 = vector.broadcast %175 : vector<1x8x8xi1> to vector<2x8x8xi1>
    %177 = vector.broadcast %cst_80 : f32 to vector<2x8x8xf32>
    %178 = arith.select %176, %174, %177 : vector<2x8x8xi1>, vector<2x8x8xf32>
    %cst_81 = arith.constant dense<0xFF800000> : vector<2x8xf32>
    %179 = vector.multi_reduction <maximumf>, %178, %cst_81 [2] : vector<2x8x8xf32> to vector<2x8xf32>
    %180 = vector.shape_cast %179 : vector<2x8xf32> to vector<2x8x1xf32>
    %181 = vector.broadcast %180 : vector<2x8x1xf32> to vector<2x8x8xf32>
    %182 = arith.subf %178, %181 : vector<2x8x8xf32>
    %183 = math.exp %182 : vector<2x8x8xf32>
    %cst_82 = arith.constant dense<0.000000e+00> : vector<2x8xf32>
    %184 = vector.multi_reduction <add>, %183, %cst_82 [2] : vector<2x8x8xf32> to vector<2x8xf32>
    %185 = vector.shape_cast %184 : vector<2x8xf32> to vector<2x8x1xf32>
    %186 = tpu.reciprocal %185 {approx = true} : vector<2x8x1xf32> -> vector<2x8x1xf32>
    %187 = vector.broadcast %186 : vector<2x8x1xf32> to vector<2x8x8xf32>
    %188 = arith.mulf %183, %187 : vector<2x8x8xf32>
    "tpu.trace_start"() <{level = 10 : i32, message = "hqk,hkd->hqd"}> : () -> ()
    %cst_83 = arith.constant dense<0.000000e+00> : vector<2x8x32xf32>
    %189 = tpu.matmul %188, %171, %cst_83 {dimension_numbers = #tpu.dot_dimension_numbers<[2], [1], [1], [2], [0, 0, 0, 1, 1, 2], [0], [0]>} : vector<2x8x8xf32>, vector<2x8x32xf32>, vector<2x8x32xf32> -> vector<2x8x32xf32>
    "tpu.trace_stop"() : () -> ()
    %190 = tpu.transpose %189, [1, 0, 2] : vector<2x8x32xf32> -> vector<8x2x32xf32>
    %191 = vector.shape_cast %190 : vector<8x2x32xf32> to vector<8x64xf32>
    %c1_84 = arith.constant 1 : index
    %c0_85 = arith.constant 0 : index
    %c0_86 = arith.constant 0 : index
    %192 = vector.load %arg6[%c1_84, %c0_85, %c0_86] : memref<2x64x64xf32, #tpu.memory_space<vmem>>, vector<1x64x64xf32>
    %193 = vector.shape_cast %192 : vector<1x64x64xf32> to vector<64x64xf32>
    %cst_87 = arith.constant dense<0.000000e+00> : vector<8x64xf32>
    %194 = tpu.matmul %191, %193, %cst_87 {dimension_numbers = #tpu.dot_dimension_numbers<[1], [0], [0], [1], [0, 0, 1, 1], [], []>} : vector<8x64xf32>, vector<64x64xf32>, vector<8x64xf32> -> vector<8x64xf32>
    %195 = arith.addf %129, %194 : vector<8x64xf32>
    %c1_88 = arith.constant 1 : index
    %c0_89 = arith.constant 0 : index
    %c0_90 = arith.constant 0 : index
    %196 = vector.load %arg7[%c1_88, %c0_89, %c0_90] : memref<2x1x64xf32, #tpu.memory_space<vmem>>, vector<1x1x64xf32>
    %197 = vector.shape_cast %196 : vector<1x1x64xf32> to vector<1x64xf32>
    %198 = vector.broadcast %197 : vector<1x64xf32> to vector<8x64xf32>
    %199 = arith.addf %195, %198 : vector<8x64xf32>
    %c1_91 = arith.constant 1 : index
    %c0_92 = arith.constant 0 : index
    %c0_93 = arith.constant 0 : index
    %200 = vector.load %arg8[%c1_91, %c0_92, %c0_93] : memref<2x1x64xf32, #tpu.memory_space<vmem>>, vector<1x1x64xf32>
    %201 = vector.shape_cast %200 : vector<1x1x64xf32> to vector<1x64xf32>
    %c1_94 = arith.constant 1 : index
    %c0_95 = arith.constant 0 : index
    %c0_96 = arith.constant 0 : index
    %202 = vector.load %arg9[%c1_94, %c0_95, %c0_96] : memref<2x1x64xf32, #tpu.memory_space<vmem>>, vector<1x1x64xf32>
    %203 = vector.shape_cast %202 : vector<1x1x64xf32> to vector<1x64xf32>
    %cst_97 = arith.constant dense<0.000000e+00> : vector<8xf32>
    %204 = vector.multi_reduction <add>, %199, %cst_97 [1] : vector<8x64xf32> to vector<8xf32>
    %205 = vector.shape_cast %204 : vector<8xf32> to vector<8x1xf32>
    %cst_98 = arith.constant 6.400000e+01 : f32
    %206 = vector.broadcast %cst_98 : f32 to vector<8x1xf32>
    %207 = arith.divf %205, %206 : vector<8x1xf32>
    %208 = vector.broadcast %207 : vector<8x1xf32> to vector<8x64xf32>
    %209 = arith.subf %199, %208 : vector<8x64xf32>
    %210 = arith.mulf %209, %209 : vector<8x64xf32>
    %cst_99 = arith.constant dense<0.000000e+00> : vector<8xf32>
    %211 = vector.multi_reduction <add>, %210, %cst_99 [1] : vector<8x64xf32> to vector<8xf32>
    %212 = vector.shape_cast %211 : vector<8xf32> to vector<8x1xf32>
    %cst_100 = arith.constant 6.400000e+01 : f32
    %213 = vector.broadcast %cst_100 : f32 to vector<8x1xf32>
    %214 = arith.divf %212, %213 : vector<8x1xf32>
    %215 = vector.broadcast %207 : vector<8x1xf32> to vector<8x64xf32>
    %216 = arith.subf %199, %215 : vector<8x64xf32>
    %cst_101 = arith.constant 9.99999974E-6 : f32
    %217 = vector.broadcast %cst_101 : f32 to vector<8x1xf32>
    %218 = arith.addf %214, %217 : vector<8x1xf32>
    %219 = math.rsqrt %218 : vector<8x1xf32>
    %220 = vector.broadcast %219 : vector<8x1xf32> to vector<8x64xf32>
    %221 = arith.mulf %216, %220 : vector<8x64xf32>
    %222 = vector.broadcast %201 : vector<1x64xf32> to vector<8x64xf32>
    %223 = arith.mulf %221, %222 : vector<8x64xf32>
    %224 = vector.broadcast %203 : vector<1x64xf32> to vector<8x64xf32>
    %225 = arith.addf %223, %224 : vector<8x64xf32>
    %c1_102 = arith.constant 1 : index
    %c0_103 = arith.constant 0 : index
    %c0_104 = arith.constant 0 : index
    %226 = vector.load %arg10[%c1_102, %c0_103, %c0_104] : memref<2x64x256xf32, #tpu.memory_space<vmem>>, vector<1x64x256xf32>
    %227 = vector.shape_cast %226 : vector<1x64x256xf32> to vector<64x256xf32>
    %cst_105 = arith.constant dense<0.000000e+00> : vector<8x256xf32>
    %228 = tpu.matmul %225, %227, %cst_105 {dimension_numbers = #tpu.dot_dimension_numbers<[1], [0], [0], [1], [0, 0, 1, 1], [], []>} : vector<8x64xf32>, vector<64x256xf32>, vector<8x256xf32> -> vector<8x256xf32>
    %c1_106 = arith.constant 1 : index
    %c0_107 = arith.constant 0 : index
    %c0_108 = arith.constant 0 : index
    %229 = vector.load %arg11[%c1_106, %c0_107, %c0_108] : memref<2x1x256xf32, #tpu.memory_space<vmem>>, vector<1x1x256xf32>
    %230 = vector.shape_cast %229 : vector<1x1x256xf32> to vector<1x256xf32>
    %231 = vector.broadcast %230 : vector<1x256xf32> to vector<8x256xf32>
    %232 = arith.addf %228, %231 : vector<8x256xf32>
    %cst_109 = arith.constant 5.000000e-01 : f32
    %233 = vector.broadcast %cst_109 : f32 to vector<8x256xf32>
    %234 = arith.mulf %233, %232 : vector<8x256xf32>
    %cst_110 = arith.constant 4.471500e-02 : f32
    %235 = vector.broadcast %cst_110 : f32 to vector<8x256xf32>
    %236 = arith.mulf %235, %232 : vector<8x256xf32>
    %237 = arith.mulf %236, %232 : vector<8x256xf32>
    %238 = arith.mulf %237, %232 : vector<8x256xf32>
    %239 = arith.addf %232, %238 : vector<8x256xf32>
    %cst_111 = arith.constant 0.797884583 : f32
    %240 = vector.broadcast %cst_111 : f32 to vector<8x256xf32>
    %241 = arith.mulf %240, %239 : vector<8x256xf32>
    %242 = math.tanh %241 : vector<8x256xf32>
    %cst_112 = arith.constant 1.000000e+00 : f32
    %243 = vector.broadcast %cst_112 : f32 to vector<8x256xf32>
    %244 = arith.addf %243, %242 : vector<8x256xf32>
    %245 = arith.mulf %234, %244 : vector<8x256xf32>
    %c1_113 = arith.constant 1 : index
    %c0_114 = arith.constant 0 : index
    %c0_115 = arith.constant 0 : index
    %246 = vector.load %arg12[%c1_113, %c0_114, %c0_115] : memref<2x256x64xf32, #tpu.memory_space<vmem>>, vector<1x256x64xf32>
    %247 = vector.shape_cast %246 : vector<1x256x64xf32> to vector<256x64xf32>
    %cst_116 = arith.constant dense<0.000000e+00> : vector<8x64xf32>
    %248 = tpu.matmul %245, %247, %cst_116 {dimension_numbers = #tpu.dot_dimension_numbers<[1], [0], [0], [1], [0, 0, 1, 1], [], []>} : vector<8x256xf32>, vector<256x64xf32>, vector<8x64xf32> -> vector<8x64xf32>
    %249 = arith.addf %199, %248 : vector<8x64xf32>
    %c1_117 = arith.constant 1 : index
    %c0_118 = arith.constant 0 : index
    %c0_119 = arith.constant 0 : index
    %250 = vector.load %arg13[%c1_117, %c0_118, %c0_119] : memref<2x1x64xf32, #tpu.memory_space<vmem>>, vector<1x1x64xf32>
    %251 = vector.shape_cast %250 : vector<1x1x64xf32> to vector<1x64xf32>
    %252 = vector.broadcast %251 : vector<1x64xf32> to vector<8x64xf32>
    %253 = arith.addf %249, %252 : vector<8x64xf32>
    %c0_120 = arith.constant 0 : index
    %c0_121 = arith.constant 0 : index
    %254 = vector.load %arg14[%c0_120, %c0_121] : memref<1x64xf32, #tpu.memory_space<vmem>>, vector<1x64xf32>
    %c0_122 = arith.constant 0 : index
    %c0_123 = arith.constant 0 : index
    %255 = vector.load %arg15[%c0_122, %c0_123] : memref<1x64xf32, #tpu.memory_space<vmem>>, vector<1x64xf32>
    %cst_124 = arith.constant dense<0.000000e+00> : vector<8xf32>
    %256 = vector.multi_reduction <add>, %253, %cst_124 [1] : vector<8x64xf32> to vector<8xf32>
    %257 = vector.shape_cast %256 : vector<8xf32> to vector<8x1xf32>
    %cst_125 = arith.constant 6.400000e+01 : f32
    %258 = vector.broadcast %cst_125 : f32 to vector<8x1xf32>
    %259 = arith.divf %257, %258 : vector<8x1xf32>
    %260 = vector.broadcast %259 : vector<8x1xf32> to vector<8x64xf32>
    %261 = arith.subf %253, %260 : vector<8x64xf32>
    %262 = arith.mulf %261, %261 : vector<8x64xf32>
    %cst_126 = arith.constant dense<0.000000e+00> : vector<8xf32>
    %263 = vector.multi_reduction <add>, %262, %cst_126 [1] : vector<8x64xf32> to vector<8xf32>
    %264 = vector.shape_cast %263 : vector<8xf32> to vector<8x1xf32>
    %cst_127 = arith.constant 6.400000e+01 : f32
    %265 = vector.broadcast %cst_127 : f32 to vector<8x1xf32>
    %266 = arith.divf %264, %265 : vector<8x1xf32>
    %267 = vector.broadcast %259 : vector<8x1xf32> to vector<8x64xf32>
    %268 = arith.subf %253, %267 : vector<8x64xf32>
    %cst_128 = arith.constant 9.99999974E-6 : f32
    %269 = vector.broadcast %cst_128 : f32 to vector<8x1xf32>
    %270 = arith.addf %266, %269 : vector<8x1xf32>
    %271 = math.rsqrt %270 : vector<8x1xf32>
    %272 = vector.broadcast %271 : vector<8x1xf32> to vector<8x64xf32>
    %273 = arith.mulf %268, %272 : vector<8x64xf32>
    %274 = vector.broadcast %254 : vector<1x64xf32> to vector<8x64xf32>
    %275 = arith.mulf %273, %274 : vector<8x64xf32>
    %276 = vector.broadcast %255 : vector<1x64xf32> to vector<8x64xf32>
    %277 = arith.addf %275, %276 : vector<8x64xf32>
    %c0_129 = arith.constant 0 : index
    %c0_130 = arith.constant 0 : index
    %278 = vector.load %arg16[%c0_129, %c0_130] : memref<64x128xf32, #tpu.memory_space<vmem>>, vector<64x128xf32>
    %cst_131 = arith.constant dense<0.000000e+00> : vector<8x128xf32>
    %279 = tpu.matmul %277, %278, %cst_131 {dimension_numbers = #tpu.dot_dimension_numbers<[1], [0], [0], [1], [0, 0, 1, 1], [], []>} : vector<8x64xf32>, vector<64x128xf32>, vector<8x128xf32> -> vector<8x128xf32>
    %c0_132 = arith.constant 0 : index
    %c0_133 = arith.constant 0 : index
    %c0_134 = arith.constant 0 : index
    %280 = vector.load %arg17[%c0_132, %c0_133, %c0_134] : memref<1x8x128xf32, #tpu.memory_space<vmem>>, vector<1x8x128xf32>
    %281 = vector.shape_cast %280 : vector<1x8x128xf32> to vector<8x128xf32>
    %282 = vector.shape_cast %279 : vector<8x128xf32> to vector<1x8x128xf32>
    tpu.vector_store %arg17[%c0_132, %c0_133, %c0_134], %282 {strides = array<i32>} : memref<1x8x128xf32, #tpu.memory_space<vmem>>, vector<1x8x128xf32>,
    return
  }
  func.func @transform_0(%arg0: i32) -> (i32, i32, i32) {
    %c0_i32 = arith.constant 0 : i32
    %c0_i32_0 = arith.constant 0 : i32
    %c0_i32_1 = arith.constant 0 : i32
    return %arg0, %c0_i32, %c0_i32_0 : i32, i32, i32
  }
  func.func @transform_1(%arg0: i32) -> (i32, i32, i32) {
    %c0_i32 = arith.constant 0 : i32
    %c0_i32_0 = arith.constant 0 : i32
    %c0_i32_1 = arith.constant 0 : i32
    %c0_i32_2 = arith.constant 0 : i32
    return %c0_i32, %c0_i32_0, %c0_i32_1 : i32, i32, i32
  }
  func.func @transform_2(%arg0: i32) -> (i32, i32, i32) {
    %c0_i32 = arith.constant 0 : i32
    %c0_i32_0 = arith.constant 0 : i32
    %c0_i32_1 = arith.constant 0 : i32
    %c0_i32_2 = arith.constant 0 : i32
    return %c0_i32, %c0_i32_0, %c0_i32_1 : i32, i32, i32
  }
  func.func @transform_3(%arg0: i32) -> (i32, i32, i32) {
    %c0_i32 = arith.constant 0 : i32
    %c0_i32_0 = arith.constant 0 : i32
    %c0_i32_1 = arith.constant 0 : i32
    %c0_i32_2 = arith.constant 0 : i32
    return %c0_i32, %c0_i32_0, %c0_i32_1 : i32, i32, i32
  }
  func.func @transform_4(%arg0: i32) -> (i32, i32, i32) {
    %c0_i32 = arith.constant 0 : i32
    %c0_i32_0 = arith.constant 0 : i32
    %c0_i32_1 = arith.constant 0 : i32
    %c0_i32_2 = arith.constant 0 : i32
    return %c0_i32, %c0_i32_0, %c0_i32_1 : i32, i32, i32
  }
  func.func @transform_5(%arg0: i32) -> (i32, i32, i32) {
    %c0_i32 = arith.constant 0 : i32
    %c0_i32_0 = arith.constant 0 : i32
    %c0_i32_1 = arith.constant 0 : i32
    %c0_i32_2 = arith.constant 0 : i32
    return %c0_i32, %c0_i32_0, %c0_i32_1 : i32, i32, i32
  }
  func.func @transform_6(%arg0: i32) -> (i32, i32, i32) {
    %c0_i32 = arith.constant 0 : i32
    %c0_i32_0 = arith.constant 0 : i32
    %c0_i32_1 = arith.constant 0 : i32
    %c0_i32_2 = arith.constant 0 : i32
    return %c0_i32, %c0_i32_0, %c0_i32_1 : i32, i32, i32
  }
  func.func @transform_7(%arg0: i32) -> (i32, i32, i32) {
    %c0_i32 = arith.constant 0 : i32
    %c0_i32_0 = arith.constant 0 : i32
    %c0_i32_1 = arith.constant 0 : i32
    %c0_i32_2 = arith.constant 0 : i32
    return %c0_i32, %c0_i32_0, %c0_i32_1 : i32, i32, i32
  }
  func.func @transform_8(%arg0: i32) -> (i32, i32, i32) {
    %c0_i32 = arith.constant 0 : i32
    %c0_i32_0 = arith.constant 0 : i32
    %c0_i32_1 = arith.constant 0 : i32
    %c0_i32_2 = arith.constant 0 : i32
    return %c0_i32, %c0_i32_0, %c0_i32_1 : i32, i32, i32
  }
  func.func @transform_9(%arg0: i32) -> (i32, i32, i32) {
    %c0_i32 = arith.constant 0 : i32
    %c0_i32_0 = arith.constant 0 : i32
    %c0_i32_1 = arith.constant 0 : i32
    %c0_i32_2 = arith.constant 0 : i32
    return %c0_i32, %c0_i32_0, %c0_i32_1 : i32, i32, i32
  }
  func.func @transform_10(%arg0: i32) -> (i32, i32, i32) {
    %c0_i32 = arith.constant 0 : i32
    %c0_i32_0 = arith.constant 0 : i32
    %c0_i32_1 = arith.constant 0 : i32
    %c0_i32_2 = arith.constant 0 : i32
    return %c0_i32, %c0_i32_0, %c0_i32_1 : i32, i32, i32
  }
  func.func @transform_11(%arg0: i32) -> (i32, i32, i32) {
    %c0_i32 = arith.constant 0 : i32
    %c0_i32_0 = arith.constant 0 : i32
    %c0_i32_1 = arith.constant 0 : i32
    %c0_i32_2 = arith.constant 0 : i32
    return %c0_i32, %c0_i32_0, %c0_i32_1 : i32, i32, i32
  }
  func.func @transform_12(%arg0: i32) -> (i32, i32, i32) {
    %c0_i32 = arith.constant 0 : i32
    %c0_i32_0 = arith.constant 0 : i32
    %c0_i32_1 = arith.constant 0 : i32
    %c0_i32_2 = arith.constant 0 : i32
    return %c0_i32, %c0_i32_0, %c0_i32_1 : i32, i32, i32
  }
  func.func @transform_13(%arg0: i32) -> (i32, i32) {
    %c0_i32 = arith.constant 0 : i32
    %c0_i32_0 = arith.constant 0 : i32
    %c0_i32_1 = arith.constant 0 : i32
    return %c0_i32, %c0_i32_0 : i32, i32
  }
  func.func @transform_14(%arg0: i32) -> (i32, i32) {
    %c0_i32 = arith.constant 0 : i32
    %c0_i32_0 = arith.constant 0 : i32
    %c0_i32_1 = arith.constant 0 : i32
    return %c0_i32, %c0_i32_0 : i32, i32
  }
  func.func @transform_15(%arg0: i32) -> (i32, i32) {
    %c0_i32 = arith.constant 0 : i32
    %c0_i32_0 = arith.constant 0 : i32
    %c0_i32_1 = arith.constant 0 : i32
    return %c0_i32, %c0_i32_0 : i32, i32
  }
  func.func @transform_16(%arg0: i32) -> (i32, i32, i32) {
    %c0_i32 = arith.constant 0 : i32
    %c0_i32_0 = arith.constant 0 : i32
    %c0_i32_1 = arith.constant 0 : i32
    return %arg0, %c0_i32, %c0_i32_0 : i32, i32, i32
  }
}

</mosaic_0001>

<bundles_post_ra>
// kernel: tpu_custom_call.1
= control target key start
LH: loop header
LB: loop body
LE: loop exit
PB: predicated region body
PF: predicated region fallthrough
CT: control target
= control target key end

     0   :  { %s4960_s0 = inlined_call_operand.vmem [shape: f32[2,8,64], index: 0, kind: input, shape index: {}]   ;;  %s4961_s1 = inlined_call_operand.vmem [shape: f32[2,1,64], index: 1, kind: input, shape index: {}]   ;;  %s4962_s2 = inlined_call_operand.vmem [shape: f32[2,1,64], index: 2, kind: input, shape index: {}]   ;;  %s4963_s3 = inlined_call_operand.vmem [shape: f32[2,64,192], index: 3, kind: input, shape index: {}]   ;;  %s4964_s4 = inlined_call_operand.vmem [shape: f32[2,1,192], index: 4, kind: input, shape index: {}]   ;;  %s4965_s5 = inlined_call_operand.vmem [shape: f32[2,64,64], index: 5, kind: input, shape index: {}]   ;;  %s4966_s6 = inlined_call_operand.vmem [shape: f32[2,1,64], index: 6, kind: input, shape index: {}]   ;;  %s4967_s7 = inlined_call_operand.vmem [shape: f32[2,1,64], index: 7, kind: input, shape index: {}]   ;;  %s4968_s8 = inlined_call_operand.vmem [shape: f32[2,1,64], index: 8, kind: input, shape index: {}]   ;;  %s4969_s9 = inlined_call_operand.vmem [shape: f32[2,64,256], index: 9, kind: input, shape index: {}]   ;;  %s4970_s10 = inlined_call_operand.vmem [shape: f32[2,1,256], index: 10, kind: input, shape index: {}]   ;;  %s4971_s11 = inlined_call_operand.vmem [shape: f32[2,256,64], index: 11, kind: input, shape index: {}]   ;;  %s4972_s12 = inlined_call_operand.vmem [shape: f32[2,1,64], index: 12, kind: input, shape index: {}]   ;;  %s4973_s13 = inlined_call_operand.vmem [shape: f32[1,64], index: 13, kind: input, shape index: {}]   ;;  %s4974_s14 = inlined_call_operand.vmem [shape: f32[1,64], index: 14, kind: input, shape index: {}]   ;;  %s4975_s15 = inlined_call_operand.vmem [shape: f32[64,128], index: 15, kind: input, shape index: {}]   ;;  %s4976_s16 = inlined_call_operand.hbm [shape: f32[2,8,128], index: 16, kind: output, shape index: {}]  }
   0x1   :  { %4987 = sst [smem:[#allocation10_spill]] %s4960_s0 }
   0x2   :  { %21 = vsyncpa [#allocation3], 0 }
   0x3   :  { %23 = vsyncpa [#allocation3 + $0x1], 0  ;;  %s4053_s21 = smov 0   ;;  %s4055_s22 = smov 0  }
   0x4   :  { %s4057_s23 = smov 0   ;;  %s4059_s24 = smov 0  }
   0x5 LB: > { %4988 = sst [smem:[#allocation5_spill]] %s3945_s21  ;;  %s4074_s25 = sadd.s32 4294967295, %s3957_s24   ;;  %s3957_s24 = sphi %s4059_s24, %s5001_s24   ;;  %s3953_s23 = sphi %s4057_s23, %s5003_s23   ;;  %s3949_s22 = sphi %s4055_s22, %s5005_s22   ;;  %s3945_s21 = sphi %s4053_s21, %s5004_s21  }
   0x6   : > { %4989 = sst [smem:[#allocation6_spill]] %s3953_s23  ;;  %s3301_s26 = sadd.s32 4294967294, %s3957_s24  }
   0x7   : > { %s4078_s27 = sadd.s32 1, %s3957_s24   ;;  %s377_s28 = sadd.s32 1, %s3953_s23 }
   0x8   : > { %4990 = sst [smem:[#allocation7_spill]] %s4078_s27  ;;  %s374_s29 = ssub.s32 %s3957_s24, %s4078_s27 }
   0x9   : > { %p387_p0 = scmp.ne.s32.totalorder %s3953_s23, %s3949_s22  ;;  %p375_p1 = scmp.eq.s32.totalorder %s374_s29, 0 }
   0xa   : > { %p388_p2 = scmp.eq.s32.totalorder %s4074_s25, 1  ;;  %p393_p3 = scmp.ne.s32.totalorder %s3949_s22, %s3945_s21 }
   0xb   : > { %p394_p4 = scmp.eq.s32.totalorder %s3301_s26, 1  ;;  %p3304_p7 = scmp.ge.s32.totalorder %s3957_s24, 1 }
   0xc   : > { %s4089_s30 = scalar_select %p375_p1, %s3953_s23, %s377_s28  }
   0xd   : > { %p4091_p5 = por %p388_p2, %p387_p0  ;;  %p4095_p6 = por %p394_p4, %p393_p3 }
   0xe   : > { %4991 = sst [smem:[#allocation8_spill]] %s4089_s30  ;;  %p464_p8 = scmp.lt.s32.totalorder %s3957_s24, 3 }
   0xf   : > { %s4993_s17 = scalar_select %p4095_p6, 1, 0 }
  0x10   : > { %p465_p9 = pnand %p3304_p7, %p464_p8 }
  0x11   : > { %4994 = sst [smem:[#allocation9_spill]] %s4993_s17  ;;  %p513_p10 = scmp.lt.s32.totalorder (!%p465_p9), %s4074_s25, 1  ;;  %vm525_vm0 = vcmask (!%p465_p9), 523264   ;;  %v555_v7 = vld [vmem:[%s4963_s3 + $0x8] sm:$0xff] (!%p465_p9)  ;;  %v557_v8 = vld [vmem:[%s4963_s3 + $0x18] sm:$0xff] (!%p465_p9)  ;;  %v554_v10 = vld [vmem:[%s4963_s3] sm:$0xff] (!%p465_p9)  ;;  %v518_v41 = vlaneseq (!%p465_p9) }
  0x12   : > { %468 = sbr.rel (%p465_p9) target bundleno = 5885 (0x16fd), region = 84  ;;  %s4995_s28 = sld [smem:[#allocation10_spill]] (!%p465_p9)  ;;  %v3650_v9 = vpack.c.bf16 (!%p465_p9), %v557_v8, %v555_v7  ;;  %v556_v11 = vld [vmem:[%s4963_s3 + $0x10] sm:$0xff] (!%p465_p9)  ;;  %v559_v13 = vld [vmem:[%s4963_s3 + $0x28] sm:$0xff] (!%p465_p9)  ;;  %v561_v14 = vld [vmem:[%s4963_s3 + $0x38] sm:$0xff] (!%p465_p9)  ;;  %v3959_v20 = vmov (!%p465_p9), 0.0  }
  0x13   : > { %v3652_v12 = vpack.c.bf16 (!%p465_p9), %v556_v11, %v554_v10  ;;  %v558_v15 = vld [vmem:[%s4963_s3 + $0x20] sm:$0xff] (!%p465_p9)  ;;  %v3654_v16 = vpack.c.bf16 (!%p465_p9), %v561_v14, %v559_v13  ;;  %v560_v17 = vld [vmem:[%s4963_s3 + $0x30] sm:$0xff] (!%p465_p9)  ;;  %v563_v18 = vld [vmem:[%s4963_s3 + $0x48] sm:$0xff] (!%p465_p9)  ;;  %649 = vmatprep.mubr.f32.mxu0 (!%p465_p9), %v3959_v20  ;;  %3553 = vmatprep.subr.mxu1 (!%p465_p9), %v3959_v20  ;;  %v4170_v42 = vshrl.u32 (!%p465_p9), %v518_v41, 7  ;;  %s4982_s27 = smov (!%p465_p9), 96   ;;  %s4984_s17 = smov (!%p465_p9), 64  }
  0x14   : > { %3651 = vmatprep.subr.bf16.mxu0 (!%p465_p9), %v3650_v9  ;;  %v565_v19 = vld [vmem:[%s4963_s3 + $0x58] sm:$0xff] (!%p465_p9)  ;;  %v3656_v21 = vpack.c.bf16 (!%p465_p9), %v560_v17, %v558_v15  ;;  %v562_v23 = vld [vmem:[%s4963_s3 + $0x40] sm:$0xff] (!%p465_p9)  ;;  %v564_v24 = vld [vmem:[%s4963_s3 + $0x50] sm:$0xff] (!%p465_p9)  ;;  %v3962_v49 = vmov (!%p465_p9), 1983009808   ;;  %vm3964_vm1 = vmmov (!%p465_p9), 0  }
  0x15   : > { %3653 = vmatpush1.bf16.msra.mxu0 (!%p465_p9), %v3652_v12  ;;  %v3658_v22 = vpack.c.bf16 (!%p465_p9), %v565_v19, %v563_v18  ;;  %v567_v25 = vld [vmem:[%s4963_s3 + $0x68] sm:$0xff] (!%p465_p9)  ;;  %v569_v26 = vld [vmem:[%s4963_s3 + $0x78] sm:$0xff] (!%p465_p9)  ;;  %v3660_v27 = vpack.c.bf16 (!%p465_p9), %v564_v24, %v562_v23  ;;  %v566_v29 = vld [vmem:[%s4963_s3 + $0x60] sm:$0xff] (!%p465_p9)  ;;  %v4173_v43 = vsub.s32 (!%p465_p9), 0, %v4170_v42  ;;  %v662_v50 = vunpack.c.l.s4 (!%p465_p9), %v3962_v49  ;;  %3555 = vmatprep.mubr.msk.f32.mxu1 (!%p465_p9), %vm3964_vm1, %v3959_v20  ;;  %s4981_s30 = smov (!%p465_p9), 32   ;;  %s4998_s26 = smov (!%p465_p9), 32  }
  0x16   : > { %3655 = vmatprep.subr.bf16.mxu0 (!%p465_p9), %v3654_v16  ;;  %v3662_v28 = vpack.c.bf16 (!%p465_p9), %v569_v26, %v567_v25  ;;  %v568_v30 = vld [vmem:[%s4963_s3 + $0x70] sm:$0xff] (!%p465_p9)  ;;  %v3307_v36 = vld [vmem:[%s4961_s1] ss:$0 sm:$0xff] (!%p465_p9)  ;;  %v3963_v52 = vmov (!%p465_p9), 1934713408   ;;  %vm1018_vm2 = vcmask (!%p465_p9), 261120  }
  0x17   : > { %v3664_v31 = vpack.c.bf16 (!%p465_p9), %v568_v30, %v566_v29  ;;  %v3308_v38 = vld [vmem:[%s4962_s2] ss:$0 sm:$0xff] (!%p465_p9)  ;;  %v663_v51 = vunpack.c.0.s8 (!%p465_p9), %v662_v50  ;;  %v693_v53 = vunpack.c.l.s4 (!%p465_p9), %v3963_v52  ;;  %vm1177_vm4 = vcmask (!%p465_p9), 64512   ;;  %s510_s20 = sand.u32 (!%p465_p9), 1, %s3949_s22   ;;  %s3437_s21 = sshll.u32 (!%p465_p9), %s4074_s25, 7 }
  0x18   : > { %v4178_v44 = vld [vmem:[%s4964_s4] sm:$0x3] (!%p465_p9)  ;;  %s4920_s23 = scalar_lea.hbm (!%p465_p9), %s4976_s16, %s3437_s21 }
  0x19   : > { %s514_s18 = scalar_select %p513_p10, %s4074_s25, 1  ;;  %3657 = vmatpush1.bf16.msra.mxu0 %v3656_v21  ;;  %v575_v45 = vrot.slane %v4178_v44, %v4173_v43  ;;  %v4187_v54 = vsub.s32 %v663_v51, %v4170_v42  ;;  %v694_v55 = vunpack.c.0.s8 %v693_v53 }
  0x1a   : > { %3659 = vmatprep.subr.bf16.mxu0 %v3658_v22  ;;  %s3967_s25 = smov [#allocation2]  }
  0x1b   : > { %s3306_s19 = sshll.u32 %s514_s18, 3  ;;  %v4191_v58 = vsub.s32 %v694_v55, %v4170_v42  ;;  %s4996_s18 = smov 64  }
  0x1c   : > { %s516_s29 = scalar_lea.vmem %s4995_s28, %s3306_s19 }
  0x1d   : > { %v4106_v0 = vld [vmem:[%s516_s29] sm:$0xff]  ;;  %3661 = vmatpush1.bf16.msra.mxu0 %v3660_v27  ;;  %s3229_s29 = scalar_lea.sflag [#allocation3], %s510_s20 }
  0x1e   : > { %v526_v1 = vsel %vm525_vm0, %v4106_v0, 0.0  ;;  %3663 = vmatprep.subr.bf16.mxu0 %v3662_v28 }
  0x1f   : > { %527 = vadd.xlane.f32.xlu0 %v526_v1 }
  0x21   : > { %3665 = vmatpush1.bf16.msra.mxu0 %v3664_v31 }
  0xac   : > { %v528_v2 = vpop.xlane.xlu0 %527 }
  0xad   : > { %v530_v3 = vmul.f32 0.015625, %v528_v2 }
  0xaf   : > { %v531_v4 = vsub.f32 %v4106_v0, %v530_v3 }
  0xb1   : > { %v532_v5 = vmul.f32 %v531_v4, %v531_v4 }
  0xb3   : > { %v533_v6 = vsel %vm525_vm0, %v532_v5, 0.0 }
  0xb4   : > { %534 = vadd.xlane.f32.xlu0 %v533_v6 }
 0x141   : > { %v535_v32 = vpop.xlane.xlu0 %534 }
 0x142   : > { %v536_v33 = vmul.f32 0.015625, %v535_v32 }
 0x144   : > { %v537_v34 = vadd.f32 1e-05, %v536_v33 }
 0x146   : > { %3861 = vrsqrt.f32 %v537_v34 }
 0x150   : > { %v3862_v35 = vpop.eup %3861 }
 0x151   : > { %v539_v37 = vmul.f32 %v3862_v35, %v531_v4 }
 0x153   : > { %v546_v39 = vmul.f32 %v3307_v36, %v539_v37 }
 0x155   : > { %v553_v40 = vadd.f32 %v3308_v38, %v546_v39 }
 0x157   : > { %3309 = vmatmul.mubr.msk.f32.vlgmr.msra.gmra.mrb[0].mxu0 %vm525_vm0, %v553_v40 }
 0x158   : > { %3589 = vmatprep.mubr.msk.f32.mxu0 %vm3964_vm1, %v3959_v20 }
 0x22a   : > { %v651_v46 = vpop.f32.mrb[0].mxu0 }
 0x22b   : > { %v652_v47 = vadd.f32 %v651_v46, %v575_v45  ;;  %v4182_v48 = vpop.f32.mrb[1].mxu0 }
 0x22d   : > { %657 = vrot.lane.b32.xlu1 %v652_v47, %s4982_s27  ;;  %v660_v56 = vcombine.high %v652_v47, %v3959_v20  ;;  %v667_v59 = vrot.slane %v652_v47, %v4187_v54 }
 0x22f   : > { %v674_v62 = vrot.slane %v660_v56, %v4187_v54 }
 0x231   : > { %776 = vrot.lane.b32.xlu1 %v652_v47, %s4984_s17 }
 0x29f   : > { %v658_v57 = vpop.permute.xlu1 %657 }
 0x2a0   : > { %v675_v60 = vcombine.high %v658_v57, %v3959_v20  ;;  %v682_v61 = vrot.slane %v658_v57, %v4187_v54  ;;  %778 = vrot.lane.b32.xlu0 %v658_v57, %s4984_s17 }
 0x2a2   : > { %v689_v63 = vrot.slane %v675_v60, %v4187_v54  ;;  %v690_v1 = vcombine.low %v667_v59, %v682_v61  ;;  %v691_v2 = vcombine.high %v667_v59, %v682_v61  ;;  %v4240_v61 = vand.u32 127, %v518_v41 }
 0x2a3   : > { %v777_v24 = vpop.permute.xlu1 %776 }
 0x2a4   : > { %v698_v3 = vrot.slane %v690_v1, %v4191_v58  ;;  %v705_v4 = vrot.slane %v691_v2, %v4191_v58  ;;  %v706_v5 = vcombine.low %v674_v62, %v689_v63  ;;  %v707_v6 = vcombine.high %v674_v62, %v689_v63 }
 0x2a5   : > { %v782_v25 = vcombine.high %v777_v24, %v3959_v20  ;;  %v789_v27 = vrot.slane %v777_v24, %v4187_v54  ;;  %vm522_vm3 = vcmp.ge.s32.totalorder %v4170_v42, %v4240_v61 }
 0x2a6   : > { %v714_v7 = vrot.slane %v706_v5, %v4191_v58  ;;  %v721_v8 = vrot.slane %v707_v6, %v4191_v58  ;;  %v726_v9 = vcombine.low %v698_v3, %v705_v4  ;;  %v3310_v10 = vcombine.high %v698_v3, %v705_v4 }
 0x2a7   : > { %v796_v30 = vrot.slane %v782_v25, %v4187_v54 }
 0x2a8   : > { %v733_v11 = vrot.slane %v726_v9, %v4187_v54  ;;  %v741_v12 = vrot.slane %v3310_v10, %v4187_v54  ;;  %v742_v13 = vcombine.low %v714_v7, %v721_v8  ;;  %v3311_v14 = vcombine.high %v714_v7, %v721_v8 }
 0x2aa   : > { %v749_v15 = vrot.slane %v742_v13, %v4187_v54  ;;  %v757_v16 = vrot.slane %v3311_v14, %v4187_v54  ;;  %v758_v17 = vcombine.low %v733_v11, %v741_v12 }
 0x2ac   : > { %v766_v18 = vcombine.low %v749_v15, %v757_v16  ;;  %v765_v19 = vrot.slane %v758_v17, %v4191_v58 }
 0x2ae   : > { %v773_v21 = vrot.slane %v766_v18, %v4191_v58  ;;  %v4255_v18 = vsub.s32 1, %v4170_v42 }
 0x2b0   : > { %v774_v22 = vcombine.low %v765_v19, %v773_v21  ;;  %v775_v23 = vcombine.high %v765_v19, %v773_v21  ;;  %v579_v19 = vrot.slane %v4178_v44, %v4255_v18 }
 0x2b2   : > { %v654_v21 = vadd.f32 %v4182_v48, %v579_v19 }
 0x2b4   : > { %v902_v24 = vcombine.high %v654_v21, %v3959_v20 }
 0x312   : > { %v779_v26 = vpop.permute.xlu0 %778 }
 0x313   : > { %v797_v28 = vcombine.high %v779_v26, %v3959_v20  ;;  %v804_v29 = vrot.slane %v779_v26, %v4187_v54  ;;  %v909_v26 = vrot.slane %v654_v21, %v4187_v54 }
 0x315   : > { %v811_v31 = vrot.slane %v797_v28, %v4187_v54  ;;  %v812_v32 = vcombine.low %v789_v27, %v804_v29  ;;  %v813_v33 = vcombine.high %v789_v27, %v804_v29  ;;  %v916_v29 = vrot.slane %v902_v24, %v4187_v54 }
 0x317   : > { %v820_v34 = vrot.slane %v812_v32, %v4191_v58  ;;  %v827_v35 = vrot.slane %v813_v33, %v4191_v58  ;;  %v828_v36 = vcombine.low %v796_v30, %v811_v31  ;;  %v829_v37 = vcombine.high %v796_v30, %v811_v31 }
 0x319   : > { %v836_v38 = vrot.slane %v828_v36, %v4191_v58  ;;  %v843_v39 = vrot.slane %v829_v37, %v4191_v58  ;;  %v848_v40 = vcombine.low %v820_v34, %v827_v35  ;;  %v3312_v45 = vcombine.high %v820_v34, %v827_v35 }
 0x31b   : > { %v855_v46 = vrot.slane %v848_v40, %v4187_v54  ;;  %v863_v47 = vrot.slane %v3312_v45, %v4187_v54  ;;  %v864_v49 = vcombine.low %v836_v38, %v843_v39  ;;  %v3313_v50 = vcombine.high %v836_v38, %v843_v39 }
 0x31d   : > { %v871_v51 = vrot.slane %v864_v49, %v4187_v54  ;;  %v879_v52 = vrot.slane %v3313_v50, %v4187_v54  ;;  %v880_v53 = vcombine.low %v855_v46, %v863_v47 }
 0x31f   : > { %v888_v55 = vcombine.low %v871_v51, %v879_v52  ;;  %v887_v56 = vrot.slane %v880_v53, %v4191_v58 }
 0x321   : > { %v895_v57 = vrot.slane %v888_v55, %v4191_v58 }
 0x323   : > { %v896_v59 = vcombine.low %v887_v56, %v895_v57  ;;  %v897_v60 = vcombine.high %v887_v56, %v895_v57 }
 0x325   : > { %3554 = vmatpush3.xpose.msk.msra.mxu1 %vm1018_vm2, %v896_v59 }
 0x326   : > { %3558 = vmatprep.subr.mxu1 %v3959_v20 }
 0x328   : > { %3556 = vmatmul.mubr.msk.f32.vlgmr.msra.gmra.mrb[0].mxu1 %vm1018_vm2, %v774_v22 }
 0x329   : > { %3559 = vmatpush3.xpose.msk.msra.mxu1 %vm1018_vm2, %v897_v60  ;;  %3560 = vmatprep.mubr.msk.f32.mxu1 %vm3964_vm1, %v3959_v20 }
 0x32a   : > { %3563 = vmatprep.subr.mxu1 %v3959_v20 }
 0x32c   : > { %3561 = vmatmul.mubr.msk.f32.vlgmr.msra.gmra.mrb[2].mxu1 %vm1018_vm2, %v775_v23 }
 0x32d   : > { %3565 = vmatprep.mubr.msk.f32.mxu1 %vm3964_vm1, %v3959_v20 }
 0x3fb   : > { %v1091_v62 = vpop.f32.mrb[0].mxu1 }
 0x3fc   : > { %v1171_v63 = vmul.f32 0.17677669, %v1091_v62  ;;  %v3557_v1 = vpop.f32.mrb[1].mxu1 }
 0x3fd   : > { %v1468_v1 = vld [vmem:[%s4965_s5 + $0x8] sm:$0xff] }
 0x3fe   : > { %v1175_v2 = vsel %vm522_vm3, %v1171_v63, -1e+30  ;;  %v1467_v63 = vld [vmem:[%s4965_s5] sm:$0xff] }
 0x3ff   : > { %v1167_v3 = vpop.f32.mrb[2].mxu1  ;;  %v1178_v4 = vsel %vm1177_vm4, %v1175_v2, -inf }
 0x400   : > { %v1172_v5 = vmul.f32 0.17677669, %v1167_v3  ;;  %1179 = vmax.xlane.f32.xlu1 %v1178_v4  ;;  %v3562_v6 = vpop.f32.mrb[3].mxu1  ;;  %v3965_v3 = vmov 0.0|0.0   ;;  %v3667_v4 = vpack.c.bf16 %v1468_v1, %v1467_v63 }
 0x401   : > { %3666 = vmatprep.subr.bf16.mxu0 %v3965_v3 }
 0x402   : > { %v1176_v41 = vsel %vm522_vm3, %v1172_v5, -1e+30  ;;  %v1470_v5 = vld [vmem:[%s4965_s5 + $0x18] sm:$0xff]  ;;  %3668 = vmatpush3.bf16.msra.mxu0 %v3667_v4 }
 0x403   : > { %v1181_v7 = vsel %vm1177_vm4, %v1176_v41, -inf  ;;  %3669 = vmatprep.subr.bf16.mxu0 %v3965_v3 }
 0x404   : > { %1182 = vmax.xlane.f32.xlu0 %v1181_v7  ;;  %v1472_v7 = vld [vmem:[%s4965_s5 + $0x28] sm:$0xff] }
 0x48d   : > { %v1180_v8 = vpop.xlane.xlu1 %1179 }
 0x48e   : > { %v1184_v9 = vsub.f32 %v1175_v2, %v1180_v8  ;;  %v1469_v2 = vld [vmem:[%s4965_s5 + $0x10] sm:$0xff] }
 0x48f   : > { %v3670_v6 = vpack.c.bf16 %v1470_v5, %v1469_v2  ;;  %v1587_v2 = vld [vmem:[%s4969_s9 + $0x8] sm:$0xff]  ;;  %v1586_v5 = vld [vmem:[%s4969_s9] sm:$0xff] }
 0x490   : > { %v1186_v10 = vmul.f32 1.442695, %v1184_v9  ;;  %v1473_v9 = vld [vmem:[%s4965_s5 + $0x30] sm:$0xff] }
 0x491   : > { %v1183_v11 = vpop.xlane.xlu0 %1182  ;;  %3671 = vmatpush3.bf16.msra.mxu0 %v3670_v6  ;;  %v1588_v6 = vld [vmem:[%s4969_s9 + $0x10] sm:$0xff] }
 0x492   : > { %3863 = vpow2.f32 %v1186_v10  ;;  %v1185_v12 = vsub.f32 %v1176_v41, %v1183_v11  ;;  %v1471_v41 = vld [vmem:[%s4965_s5 + $0x20] sm:$0xff]  ;;  %3672 = vmatprep.subr.bf16.mxu0 %v3965_v3  ;;  %v1474_v10 = vld [vmem:[%s4965_s5 + $0x38] sm:$0xff] }
 0x493   : > { %v3673_v8 = vpack.c.bf16 %v1472_v7, %v1471_v41  ;;  %v3676_v11 = vpack.c.bf16 %v1474_v10, %v1473_v9  ;;  %v3680_v41 = vpack.c.bf16 %v1588_v6, %v1586_v5  ;;  %v1591_v7 = vld [vmem:[%s4969_s9 + $0x28] sm:$0xff]  ;;  %v1590_v10 = vld [vmem:[%s4969_s9 + $0x20] sm:$0xff] }
 0x494   : > { %v1188_v13 = vmul.f32 1.442695, %v1185_v12  ;;  %v1731_v5 = vld [vmem:[%s4971_s11 + $0xc8] sm:$0xff]  ;;  %v1714_v6 = vld [vmem:[%s4971_s11 + $0x40] sm:$0xff] }
 0x495   : > { %3674 = vmatpush3.bf16.msra.mxu0 %v3673_v8  ;;  %v1593_v8 = vld [vmem:[%s4969_s9 + $0x38] sm:$0xff] }
 0x496   : > { %3865 = vpow2.f32 %v1188_v13  ;;  %3675 = vmatprep.subr.bf16.mxu0 %v3965_v3  ;;  %v3682_v9 = vpack.c.bf16 %v1593_v8, %v1591_v7  ;;  %v1732_v8 = vld [vmem:[%s4971_s11 + $0xd0] sm:$0xff] }
 0x499   : > { %3677 = vmatpush3.bf16.msra.mxu0 %v3676_v11  ;;  %v1592_v11 = vld [vmem:[%s4969_s9 + $0x30] sm:$0xff] }
 0x49c   : > { %v3864_v14 = vpop.eup %3863 }
 0x49d   : > { %v1190_v15 = vsel %vm1177_vm4, %v3864_v14, 0.0 }
 0x49e   : > { %1191 = vadd.xlane.f32.xlu1 %v1190_v15 }
 0x4a0   : > { %v3866_v16 = vpop.eup %3865 }
 0x4a1   : > { %v1193_v17 = vsel %vm1177_vm4, %v3866_v16, 0.0 }
 0x4a2   : > { %1194 = vadd.xlane.f32.xlu1 %v1193_v17 }
 0x4b3   : > { %899 = vrot.lane.b32.xlu1 %v654_v21, %s4982_s27  ;;  %s3305_s27 = sshll.u32 %s510_s20, 3 }
 0x4b4   : > { %s512_s17 = scalar_lea.vmem [#allocation2], %s3305_s27 }
 0x4b5   : > { %s3242_s19 = sshll.u32 %s512_s17, 4  ;;  %s4915_s19 = int_to_ptr.vmem [resolvable:$true] %s3242_s19 }
 0x52b   : > { %v1192_v22 = vpop.xlane.xlu1 %1191 }
 0x52c   : > { %3867 = vrcp.f32 %v1192_v22 }
 0x52f   : > { %v1195_v23 = vpop.xlane.xlu1 %1194 }
 0x530   : > { %3869 = vrcp.f32 %v1195_v23 }
 0x533   : > { %v900_v25 = vpop.permute.xlu1 %899 }
 0x534   : > { %v917_v27 = vcombine.high %v900_v25, %v3959_v20  ;;  %v924_v28 = vrot.slane %v900_v25, %v4187_v54 }
 0x536   : > { %v931_v30 = vrot.slane %v917_v27, %v4187_v54  ;;  %v932_v44 = vcombine.low %v909_v26, %v924_v28  ;;  %v933_v31 = vcombine.high %v909_v26, %v924_v28  ;;  %v3868_v52 = vpop.eup %3867 }
 0x537   : > { %v1198_v59 = vmul.f32 %v3868_v52, %v3864_v14  ;;  %v3325_v52 = vld [vmem:[%s4966_s6] ss:$0 sm:$0xff] }
 0x538   : > { %v940_v48 = vrot.slane %v932_v44, %v4191_v58  ;;  %v947_v32 = vrot.slane %v933_v31, %v4191_v58  ;;  %v948_v33 = vcombine.low %v916_v29, %v931_v30  ;;  %v949_v34 = vcombine.high %v916_v29, %v931_v30 }
 0x53a   : > { %v956_v35 = vrot.slane %v948_v33, %v4191_v58  ;;  %v963_v36 = vrot.slane %v949_v34, %v4191_v58  ;;  %v968_v37 = vcombine.low %v940_v48, %v947_v32  ;;  %v3314_v38 = vcombine.high %v940_v48, %v947_v32  ;;  %v3870_v57 = vpop.eup %3869 }
 0x53b   : > { %v1199_v62 = vmul.f32 %v3870_v57, %v3866_v16 }
 0x53c   : > { %v975_v39 = vrot.slane %v968_v37, %v4187_v54  ;;  %v983_v40 = vrot.slane %v3314_v38, %v4187_v54  ;;  %v984_v45 = vcombine.low %v956_v35, %v963_v36  ;;  %v3315_v46 = vcombine.high %v956_v35, %v963_v36 }
 0x53e   : > { %v991_v47 = vrot.slane %v984_v45, %v4187_v54  ;;  %v999_v49 = vrot.slane %v3315_v46, %v4187_v54  ;;  %v1000_v50 = vcombine.low %v975_v39, %v983_v40 }
 0x540   : > { %v1008_v51 = vcombine.low %v991_v47, %v999_v49  ;;  %v1007_v53 = vrot.slane %v1000_v50, %v4191_v58 }
 0x542   : > { %v1015_v55 = vrot.slane %v1008_v51, %v4191_v58 }
 0x544   : > { %v1016_v56 = vcombine.low %v1007_v53, %v1015_v55  ;;  %v1017_v60 = vcombine.high %v1007_v53, %v1015_v55 }
 0x546   : > { %3564 = vmatpush3.msra.mxu1 %v1016_v56 }
 0x547   : > { %3566 = vmatmul.mubr.msk.f32.vlgmr.msra.gmra.mrb[4].mxu1 %vm1177_vm4, %v1198_v59  ;;  %3568 = vmatprep.subr.mxu1 %v3959_v20 }
 0x548   : > { %3569 = vmatpush3.msra.mxu1 %v1017_v60  ;;  %3570 = vmatprep.mubr.msk.f32.mxu1 %vm3964_vm1, %v3959_v20 }
 0x54b   : > { %3571 = vmatmul.mubr.msk.f32.vlgmr.msra.gmra.mrb[6].mxu1 %vm1177_vm4, %v1199_v62 }
 0x54c   : > { %1681 = vmatprep.mubr.f32.mxu1 %v3959_v20 }
 0x61a   : > { %v1269_v12 = vpop.f32.mrb[4].mxu1 }
 0x61b   : > { %v3567_v13 = vpop.f32.mrb[5].mxu1  ;;  %v1346_v14 = vcombine.high %v1269_v12, %v3959_v20  ;;  %v1353_v16 = vrot.slane %v1269_v12, %v4187_v54  ;;  %v3684_v12 = vpack.c.bf16 %v1592_v11, %v1590_v10 }
 0x61c   : > { %v1595_v13 = vld [vmem:[%s4969_s9 + $0x48] sm:$0xff] }
 0x61d   : > { %v1360_v22 = vrot.slane %v1346_v14, %v4187_v54  ;;  %v1597_v14 = vld [vmem:[%s4969_s9 + $0x58] sm:$0xff] }
 0x61e   : > { %v1342_v15 = vpop.f32.mrb[6].mxu1 }
 0x61f   : > { %v1361_v17 = vcombine.high %v1342_v15, %v3959_v20  ;;  %v1368_v19 = vrot.slane %v1342_v15, %v4187_v54  ;;  %v3572_v21 = vpop.f32.mrb[7].mxu1  ;;  %v3686_v15 = vpack.c.bf16 %v1597_v14, %v1595_v13  ;;  %v1717_v13 = vld [vmem:[%s4971_s11 + $0x58] sm:$0xff]  ;;  %v1734_v14 = vld [vmem:[%s4971_s11 + $0xe0] sm:$0xff] }
 0x620   : > { %v1599_v21 = vld [vmem:[%s4969_s9 + $0x68] sm:$0xff] }
 0x621   : > { %v1375_v23 = vrot.slane %v1361_v17, %v4187_v54  ;;  %v1376_v24 = vcombine.low %v1353_v16, %v1368_v19  ;;  %v1377_v25 = vcombine.high %v1353_v16, %v1368_v19  ;;  %v1594_v16 = vld [vmem:[%s4969_s9 + $0x40] sm:$0xff]  ;;  %v1596_v17 = vld [vmem:[%s4969_s9 + $0x50] sm:$0xff] }
 0x622   : > { %v3688_v19 = vpack.c.bf16 %v1596_v17, %v1594_v16 }
 0x623   : > { %v1384_v26 = vrot.slane %v1376_v24, %v4191_v58  ;;  %v1391_v27 = vrot.slane %v1377_v25, %v4191_v58  ;;  %v1392_v28 = vcombine.low %v1360_v22, %v1375_v23  ;;  %v1393_v29 = vcombine.high %v1360_v22, %v1375_v23  ;;  %v1601_v22 = vld [vmem:[%s4969_s9 + $0x78] sm:$0xff]  ;;  %v1598_v23 = vld [vmem:[%s4969_s9 + $0x60] sm:$0xff]  ;;  %v1600_v25 = vld [vmem:[%s4969_s9 + $0x70] sm:$0xff] }
 0x624   : > { %v3690_v24 = vpack.c.bf16 %v1601_v22, %v1599_v21  ;;  %v1719_v21 = vld [vmem:[%s4971_s11 + $0x68] sm:$0xff]  ;;  %v1736_v22 = vld [vmem:[%s4971_s11 + $0xf0] sm:$0xff] }
 0x625   : > { %v1400_v30 = vrot.slane %v1392_v28, %v4191_v58  ;;  %v1407_v44 = vrot.slane %v1393_v29, %v4191_v58  ;;  %v1412_v31 = vcombine.low %v1384_v26, %v1391_v27  ;;  %v3322_v48 = vcombine.high %v1384_v26, %v1391_v27  ;;  %v1722_v27 = vld [vmem:[%s4971_s11 + $0x80] sm:$0xff]  ;;  %v1723_v28 = vld [vmem:[%s4971_s11 + $0x88] sm:$0xff] }
 0x626   : > { %v3692_v26 = vpack.c.bf16 %v1600_v25, %v1598_v23  ;;  %v1706_v29 = vld [vmem:[%s4971_s11] sm:$0xff]  ;;  %v1737_v23 = vld [vmem:[%s4971_s11 + $0xf8] sm:$0xff] }
 0x627   : > { %v1419_v32 = vrot.slane %v1412_v31, %v4187_v54  ;;  %v1427_v33 = vrot.slane %v3322_v48, %v4187_v54  ;;  %v1428_v34 = vcombine.low %v1400_v30, %v1407_v44  ;;  %v3323_v35 = vcombine.high %v1400_v30, %v1407_v44  ;;  %v1707_v44 = vld [vmem:[%s4971_s11 + $0x8] sm:$0xff] }
 0x628   : > { %v3694_v30 = vpack.c.bf16 %v1723_v28, %v1722_v27  ;;  %v3696_v31 = vpack.c.bf16 %v1707_v44, %v1706_v29  ;;  %v3722_v25 = vpack.c.bf16 %v1737_v23, %v1736_v22  ;;  %v1721_v27 = vld [vmem:[%s4971_s11 + $0x78] sm:$0xff]  ;;  %v1602_v29 = vld [vmem:[%s4970_s10] sm:$0x3]  ;;  %v3343_v22 = vld [vmem:[%s4963_s3 + $0xc8] sm:$0xff] }
 0x629   : > { %v1435_v36 = vrot.slane %v1428_v34, %v4187_v54  ;;  %v1443_v37 = vrot.slane %v3323_v35, %v4187_v54  ;;  %v1444_v38 = vcombine.low %v1419_v32, %v1427_v33  ;;  %v3326_v35 = vld [vmem:[%s4967_s7] ss:$0 sm:$0xff]  ;;  %v1611_v44 = vrot.slane %v1602_v29, %v4255_v18  ;;  %v3345_v23 = vld [vmem:[%s4963_s3 + $0xd8] sm:$0xff] }
 0x62a   : > { %3695 = vmatprep.subr.bf16.mxu0 %v3694_v30  ;;  %v1607_v30 = vrot.slane %v1602_v29, %v4173_v43  ;;  %v3349_v29 = vld [vmem:[%s4963_s3 + $0xf8] sm:$0xff] }
 0x62b   : > { %v1452_v39 = vcombine.low %v1435_v36, %v1443_v37  ;;  %v1451_v40 = vrot.slane %v1444_v38, %v4191_v58  ;;  %v3327_v37 = vld [vmem:[%s4968_s8] ss:$0 sm:$0xff] }
 0x62d   : > { %v1459_v45 = vrot.slane %v1452_v39, %v4191_v58 }
 0x62f   : > { %v1461_v46 = vcombine.high %v1451_v40, %v1459_v45  ;;  %v1460_v47 = vcombine.low %v1451_v40, %v1459_v45  ;;  %v1724_v40 = vld [vmem:[%s4971_s11 + $0x90] sm:$0xff]  ;;  %v1725_v45 = vld [vmem:[%s4971_s11 + $0x98] sm:$0xff] }
 0x631   : > { %1463 = vrot.lane.b32.xlu0 %v1461_v46, %s4981_s30  ;;  %v3698_v46 = vpack.c.bf16 %v1725_v45, %v1724_v40  ;;  %s4997_s30 = smov 96  }
 0x6a3   : > { %v1464_v49 = vpop.permute.xlu0 %1463 }
 0x6a4   : > { %v1466_v50 = vsel %vm1018_vm2, %v1460_v47, %v1464_v49  ;;  %v1708_v47 = vld [vmem:[%s4971_s11 + $0x10] sm:$0xff]  ;;  %v1709_v49 = vld [vmem:[%s4971_s11 + $0x18] sm:$0xff] }
 0x6a5   : > { %3590 = vmatmul.mubr.msk.f32.vlgmr.msra.gmra.mrb[2].mxu0 %vm525_vm0, %v1466_v50  ;;  %v3700_v50 = vpack.c.bf16 %v1709_v49, %v1708_v47 }
 0x6a6   : > { %3697 = vmatpush3.bf16.msra.mxu0 %v3696_v31 }
 0x6a7   : > { %3699 = vmatprep.subr.bf16.mxu0 %v3698_v46 }
 0x6aa   : > { %3701 = vmatpush3.bf16.msra.mxu0 %v3700_v50 }
 0x778   : > { %v1544_v51 = vpop.f32.mrb[2].mxu0 }
 0x779   : > { %v1548_v53 = vadd.f32 %v1544_v51, %v4106_v0  ;;  %v3591_v55 = vpop.f32.mrb[3].mxu0  ;;  %v1589_v0 = vld [vmem:[%s4969_s9 + $0x18] sm:$0xff]  ;;  %v1726_v51 = vld [vmem:[%s4971_s11 + $0xa0] sm:$0xff] }
 0x77a   : > { %v3678_v4 = vpack.c.bf16 %v1589_v0, %v1587_v2  ;;  %v1710_v55 = vld [vmem:[%s4971_s11 + $0x20] sm:$0xff]  ;;  %v1713_v2 = vld [vmem:[%s4971_s11 + $0x38] sm:$0xff] }
 0x77b   : > { %v4334_v56 = vadd.f32 %v3325_v52, %v1548_v53  ;;  %v1727_v52 = vld [vmem:[%s4971_s11 + $0xa8] sm:$0xff]  ;;  %v1730_v0 = vld [vmem:[%s4971_s11 + $0xc0] sm:$0xff] }
 0x77c   : > { %3679 = vmatprep.subr.bf16.mxu1 %v3678_v4  ;;  %v3702_v53 = vpack.c.bf16 %v1727_v52, %v1726_v51  ;;  %v3710_v7 = vpack.c.bf16 %v1731_v5, %v1730_v0 }
 0x77d   : > { %v1559_v57 = vsel %vm525_vm0, %v4334_v56, 0.0  ;;  %3681 = vmatpush1.bf16.msra.mxu1 %v3680_v41  ;;  %v1715_v41 = vld [vmem:[%s4971_s11 + $0x48] sm:$0xff] }
 0x77e   : > { %1560 = vadd.xlane.f32.xlu1 %v1559_v57  ;;  %3683 = vmatprep.subr.bf16.mxu1 %v3682_v9  ;;  %v1711_v57 = vld [vmem:[%s4971_s11 + $0x28] sm:$0xff]  ;;  %v1733_v9 = vld [vmem:[%s4971_s11 + $0xd8] sm:$0xff]  ;;  %v3712_v10 = vpack.c.bf16 %v1715_v41, %v1714_v6 }
 0x77f   : > { %3703 = vmatprep.subr.bf16.mxu0 %v3702_v53  ;;  %v3714_v11 = vpack.c.bf16 %v1733_v9, %v1732_v8  ;;  %v3335_v9 = vld [vmem:[%s4963_s3 + $0x88] sm:$0xff] }
 0x781   : > { %3685 = vmatpush1.bf16.msra.mxu1 %v3684_v12  ;;  %v1716_v12 = vld [vmem:[%s4971_s11 + $0x50] sm:$0xff] }
 0x782   : > { %3687 = vmatprep.subr.bf16.mxu1 %v3686_v15  ;;  %v1735_v15 = vld [vmem:[%s4971_s11 + $0xe8] sm:$0xff]  ;;  %v3716_v16 = vpack.c.bf16 %v1717_v13, %v1716_v12  ;;  %v3336_v12 = vld [vmem:[%s4963_s3 + $0x90] sm:$0xff] }
 0x783   : > { %v3718_v17 = vpack.c.bf16 %v1735_v15, %v1734_v14  ;;  %v3339_v14 = vld [vmem:[%s4963_s3 + $0xa8] sm:$0xff]  ;;  %v3341_v15 = vld [vmem:[%s4963_s3 + $0xb8] sm:$0xff] }
 0x785   : > { %3689 = vmatpush1.bf16.msra.mxu1 %v3688_v19  ;;  %v1718_v19 = vld [vmem:[%s4971_s11 + $0x60] sm:$0xff] }
 0x786   : > { %3691 = vmatprep.subr.bf16.mxu1 %v3690_v24  ;;  %v3720_v24 = vpack.c.bf16 %v1719_v21, %v1718_v19  ;;  %v3340_v19 = vld [vmem:[%s4963_s3 + $0xb0] sm:$0xff] }
 0x789   : > { %3693 = vmatpush1.bf16.msra.mxu1 %v3692_v26  ;;  %v1720_v26 = vld [vmem:[%s4971_s11 + $0x70] sm:$0xff] }
 0x78a   : > { %v3724_v28 = vpack.c.bf16 %v1721_v27, %v1720_v26  ;;  %v3344_v26 = vld [vmem:[%s4963_s3 + $0xd0] sm:$0xff] }
 0x80b   : > { %v1561_v59 = vpop.xlane.xlu1 %1560 }
 0x80c   : > { %v1562_v60 = vmul.f32 0.015625, %v1561_v59  ;;  %v3704_v59 = vpack.c.bf16 %v1711_v57, %v1710_v55 }
 0x80e   : > { %v1563_v62 = vsub.f32 %v4334_v56, %v1562_v60  ;;  %3705 = vmatpush3.bf16.msra.mxu0 %v3704_v59  ;;  %v1728_v60 = vld [vmem:[%s4971_s11 + $0xb0] sm:$0xff] }
 0x810   : > { %v1564_v63 = vmul.f32 %v1563_v62, %v1563_v62 }
 0x812   : > { %v1565_v1 = vsel %vm525_vm0, %v1564_v63, 0.0 }
 0x813   : > { %1566 = vadd.xlane.f32.xlu0 %v1565_v1  ;;  %v1712_v1 = vld [vmem:[%s4971_s11 + $0x30] sm:$0xff] }
 0x814   : > { %v3708_v4 = vpack.c.bf16 %v1713_v2, %v1712_v1  ;;  %v3329_v1 = vld [vmem:[%s4972_s12] ss:$0 sm:$0xff] }
 0x8a0   : > { %v1567_v48 = vpop.xlane.xlu0 %1566 }
 0x8a1   : > { %v1568_v32 = vmul.f32 0.015625, %v1567_v48 }
 0x8a3   : > { %v1569_v33 = vadd.f32 1e-05, %v1568_v32 }
 0x8a5   : > { %3871 = vrsqrt.f32 %v1569_v33 }
 0x8af   : > { %v3872_v34 = vpop.eup %3871 }
 0x8b0   : > { %v1571_v36 = vmul.f32 %v3872_v34, %v1563_v62  ;;  %v1729_v62 = vld [vmem:[%s4971_s11 + $0xb8] sm:$0xff] }
 0x8b1   : > { %v3706_v63 = vpack.c.bf16 %v1729_v62, %v1728_v60 }
 0x8b2   : > { %v1578_v38 = vmul.f32 %v3326_v35, %v1571_v36 }
 0x8b3   : > { %3707 = vmatprep.subr.bf16.mxu0 %v3706_v63 }
 0x8b4   : > { %v1585_v39 = vadd.f32 %v3327_v37, %v1578_v38  ;;  %3709 = vmatpush3.bf16.msra.mxu0 %v3708_v4 }
 0x8b5   : > { %3711 = vmatprep.subr.bf16.mxu0 %v3710_v7 }
 0x8b6   : > { %3328 = vmatmul.mubr.msk.f32.vlgmr.msra.gmra.mrb[8].mxu1 %vm525_vm0, %v1585_v39 }
 0x8b7   : > { %1945 = vmatprep.mubr.f32.mxu1 %v3959_v20 }
 0x8b8   : > { %3713 = vmatpush3.bf16.msra.mxu0 %v3712_v10 }
 0x8b9   : > { %3715 = vmatprep.subr.bf16.mxu0 %v3714_v11  ;;  %v3334_v11 = vld [vmem:[%s4963_s3 + $0x80] sm:$0xff] }
 0x8ba   : > { %v3728_v13 = vpack.c.bf16 %v3336_v12, %v3334_v11 }
 0x8bc   : > { %3717 = vmatpush3.bf16.msra.mxu0 %v3716_v16  ;;  %v3730_v16 = vpack.c.bf16 %v3341_v15, %v3339_v14 }
 0x8bd   : > { %3719 = vmatprep.subr.bf16.mxu0 %v3718_v17  ;;  %v3338_v17 = vld [vmem:[%s4963_s3 + $0xa0] sm:$0xff] }
 0x8be   : > { %v3732_v21 = vpack.c.bf16 %v3340_v19, %v3338_v17 }
 0x8c0   : > { %3721 = vmatpush3.bf16.msra.mxu0 %v3720_v24  ;;  %v3734_v24 = vpack.c.bf16 %v3345_v23, %v3343_v22 }
 0x8c1   : > { %3723 = vmatprep.subr.bf16.mxu0 %v3722_v25  ;;  %v3342_v25 = vld [vmem:[%s4963_s3 + $0xc0] sm:$0xff] }
 0x8c2   : > { %v3736_v27 = vpack.c.bf16 %v3344_v26, %v3342_v25 }
 0x8c4   : > { %3725 = vmatpush3.bf16.msra.mxu0 %v3724_v28  ;;  %v3347_v28 = vld [vmem:[%s4963_s3 + $0xe8] sm:$0xff] }
 0x8c5   : > { %3742 = vmatprep.subr.bf16.mxu0 %v3965_v3 }
 0x989   : > { %v1683_v31 = vpop.f32.mrb[8].mxu1 }
 0x98a   : > { %v1684_v48 = vadd.f32 %v1683_v31, %v1607_v30  ;;  %v1685_v32 = vpop.f32.mrb[9].mxu1  ;;  %v3346_v30 = vld [vmem:[%s4963_s3 + $0xe0] sm:$0xff]  ;;  %v3348_v31 = vld [vmem:[%s4963_s3 + $0xf0] sm:$0xff] }
 0x98b   : > { %v1686_v33 = vadd.f32 %v1685_v32, %v1611_v44  ;;  %v3738_v44 = vpack.c.bf16 %v3349_v29, %v3347_v28 }
 0x98c   : > { %v1690_v34 = vmul.f32 0.044715, %v1684_v48  ;;  %v1688_v55 = vmul.f32 0.5, %v1684_v48 }
 0x98d   : > { %v1691_v35 = vmul.f32 0.044715, %v1686_v33  ;;  %v1689_v52 = vmul.f32 0.5, %v1686_v33 }
 0x98e   : > { %v1692_v36 = vmul.f32 %v1690_v34, %v1684_v48 }
 0x98f   : > { %v1693_v37 = vmul.f32 %v1691_v35, %v1686_v33 }
 0x990   : > { %v1694_v38 = vmul.f32 %v1692_v36, %v1684_v48  ;;  %v3332_v36 = vld [vmem:[%s4961_s1 + $0x1] ss:$0 sm:$0xff] }
 0x991   : > { %v1695_v39 = vmul.f32 %v1693_v37, %v1686_v33 }
 0x992   : > { %v1696_v40 = vadd.f32 %v1694_v38, %v1684_v48  ;;  %v3740_v48 = vpack.c.bf16 %v3348_v31, %v3346_v30  ;;  %v3333_v38 = vld [vmem:[%s4962_s2 + $0x1] ss:$0 sm:$0xff] }
 0x993   : > { %v1697_v45 = vadd.f32 %v1695_v39, %v1686_v33 }
 0x994   : > { %v1698_v46 = vmul.f32 0.7978846, %v1696_v40 }
 0x995   : > { %v1699_v47 = vmul.f32 0.7978846, %v1697_v45  ;;  %v4571_v45 = vld [vmem:[%s4964_s4 + $0x2] sm:$0x3] }
 0x996   : > { %3873 = vtanh.f32 %v1698_v46  ;;  %v1871_v46 = vrot.slane %v4571_v45, %v4173_v43  ;;  %v1875_v42 = vrot.slane %v4571_v45, %v4255_v18 }
 0x997   : > { %3875 = vtanh.f32 %v1699_v47 }
 0x9a0   : > { %v3874_v49 = vpop.eup %3873 }
 0x9a1   : > { %v3876_v50 = vpop.eup %3875  ;;  %v1702_v51 = vadd.f32 1.0, %v3874_v49 }
 0x9a2   : > { %v1703_v53 = vadd.f32 1.0, %v3876_v50 }
 0x9a3   : > { %v1704_v59 = vmul.f32 %v1702_v51, %v1688_v55 }
 0x9a4   : > { %v1705_v57 = vmul.f32 %v1703_v53, %v1689_v52 }
 0x9a6   : > { %1802 = vmatprep.mubr.f32.mxu0 %v1705_v57 }
 0x9a7   : > { %1803 = vmatmul.mubr.f32.vlgmr.msra.gmra.mrb[4].mxu0 %v1704_v59 }
 0x9a8   : > { %3628 = vmatprep.mubr.msk.f32.mxu0 %vm3964_vm1, %v3959_v20 }
 0xa7a   : > { %v3489_v60 = vpop.f32.mrb[4].mxu0 }
 0xa7b   : > { %v3490_v62 = vpop.f32.mrb[5].mxu0 }
 0xa7c   : > { %v3491_v63 = vadd.f32 %v3490_v62, %v3489_v60 }
 0xa7e   : > { %v1808_v2 = vadd.f32 %v3491_v63, %v4334_v56  ;;  %v3337_v56 = vld [vmem:[%s4963_s3 + $0x98] sm:$0xff] }
 0xa7f   : > { %v3726_v10 = vpack.c.bf16 %v3337_v56, %v3335_v9 }
 0xa80   : > { %v4504_v0 = vadd.f32 %v3329_v1, %v1808_v2 }
 0xa81   : > { %3727 = vmatprep.subr.bf16.mxu1 %v3726_v10 }
 0xa82   : > { %v1821_v4 = vsel %vm525_vm0, %v4504_v0, 0.0  ;;  %3729 = vmatpush1.bf16.msra.mxu1 %v3728_v13 }
 0xa83   : > { %1822 = vadd.xlane.f32.xlu1 %v1821_v4  ;;  %3731 = vmatprep.subr.bf16.mxu1 %v3730_v16 }
 0xa86   : > { %3733 = vmatpush1.bf16.msra.mxu1 %v3732_v21 }
 0xa87   : > { %3735 = vmatprep.subr.bf16.mxu1 %v3734_v24 }
 0xa8a   : > { %3737 = vmatpush1.bf16.msra.mxu1 %v3736_v27 }
 0xa8b   : > { %3739 = vmatprep.subr.bf16.mxu1 %v3738_v44 }
 0xa8e   : > { %3741 = vmatpush1.bf16.msra.mxu1 %v3740_v48 }
 0xa8f   : > { %3592 = vmatprep.subr.mxu1 %v3959_v20 }
 0xb10   : > { %v1823_v5 = vpop.xlane.xlu1 %1822 }
 0xb11   : > { %v1824_v6 = vmul.f32 0.015625, %v1823_v5 }
 0xb13   : > { %v1825_v41 = vsub.f32 %v4504_v0, %v1824_v6 }
 0xb15   : > { %v1826_v7 = vmul.f32 %v1825_v41, %v1825_v41 }
 0xb17   : > { %v1827_v8 = vsel %vm525_vm0, %v1826_v7, 0.0 }
 0xb18   : > { %1828 = vadd.xlane.f32.xlu1 %v1827_v8 }
 0xba5   : > { %v1829_v32 = vpop.xlane.xlu1 %1828 }
 0xba6   : > { %v1830_v33 = vmul.f32 0.015625, %v1829_v32 }
 0xba8   : > { %v1831_v34 = vadd.f32 1e-05, %v1830_v33 }
 0xbaa   : > { %3877 = vrsqrt.f32 %v1831_v34 }
 0xbb4   : > { %v3878_v35 = vpop.eup %3877 }
 0xbb5   : > { %v1833_v37 = vmul.f32 %v3878_v35, %v1825_v41 }
 0xbb7   : > { %v1840_v39 = vmul.f32 %v3332_v36, %v1833_v37 }
 0xbb9   : > { %v1847_v40 = vadd.f32 %v3333_v38, %v1840_v39 }
 0xbbb   : > { %3351 = vmatmul.mubr.msk.f32.vlgmr.msra.gmra.mrb[10].mxu1 %vm525_vm0, %v1847_v40 }
 0xbbc   : > { %3594 = vmatprep.mubr.msk.f32.mxu1 %vm3964_vm1, %v3959_v20 }
 0xc8e   : > { %v1947_v47 = vpop.f32.mrb[10].mxu1 }
 0xc8f   : > { %v1948_v49 = vadd.f32 %v1947_v47, %v1871_v46  ;;  %v4575_v50 = vpop.f32.mrb[11].mxu1 }
 0xc90   : > { %v1950_v61 = vadd.f32 %v4575_v50, %v1875_v42 }
 0xc91   : > { %2072 = vrot.lane.b32.xlu0 %v1948_v49, %s4996_s18  ;;  %1953 = vrot.lane.b32.xlu1 %v1948_v49, %s4997_s30  ;;  %v1956_v53 = vcombine.high %v1948_v49, %v3959_v20  ;;  %v1963_v62 = vrot.slane %v1948_v49, %v4187_v54 }
 0xc93   : > { %v1970_v57 = vrot.slane %v1956_v53, %v4187_v54 }
 0xd03   : > { %v1954_v51 = vpop.permute.xlu1 %1953  ;;  %v2073_v60 = vpop.permute.xlu0 %2072 }
 0xd04   : > { %2074 = vrot.lane.b32.xlu1 %v1954_v51, %s4996_s18  ;;  %v1971_v52 = vcombine.high %v1954_v51, %v3959_v20  ;;  %v1978_v59 = vrot.slane %v1954_v51, %v4187_v54  ;;  %v2078_v5 = vcombine.high %v2073_v60, %v3959_v20  ;;  %v2085_v8 = vrot.slane %v2073_v60, %v4187_v54  ;;  %s3895_s18 = scalar_lea.vmem %s4915_s19, 128 }
 0xd05   : > { %p3896_p11 = scmp.ne.s32.totalorder %s4915_s19, %s3895_s18 }
 0xd06   : > { %v1985_v55 = vrot.slane %v1971_v52, %v4187_v54  ;;  %v1986_v2 = vcombine.low %v1963_v62, %v1978_v59  ;;  %v1987_v4 = vcombine.high %v1963_v62, %v1978_v59  ;;  %v2092_v12 = vrot.slane %v2078_v5, %v4187_v54 }
 0xd07   : > { %p3897_p12 = pnand %p3896_p11, %p4091_p5 }
 0xd08   : > { %v2002_v63 = vcombine.low %v1970_v57, %v1985_v55  ;;  %v2003_v1 = vcombine.high %v1970_v57, %v1985_v55  ;;  %v1994_v10 = vrot.slane %v1986_v2, %v4191_v58  ;;  %v2001_v11 = vrot.slane %v1987_v4, %v4191_v58 }
 0xd09   : > { %p3898_p13 = pneg %p3897_p12 }
 0xd0a   : > { %v2010_v6 = vrot.slane %v2002_v63, %v4191_v58  ;;  %v2017_v41 = vrot.slane %v2003_v1, %v4191_v58  ;;  %v2022_v24 = vcombine.low %v1994_v10, %v2001_v11  ;;  %v3352_v25 = vcombine.high %v1994_v10, %v2001_v11 }
 0xd0c   : > { %v2038_v16 = vcombine.low %v2010_v6, %v2017_v41  ;;  %v3353_v17 = vcombine.high %v2010_v6, %v2017_v41  ;;  %v2029_v34 = vrot.slane %v2022_v24, %v4187_v54  ;;  %v2037_v35 = vrot.slane %v3352_v25, %v4187_v54 }
 0xd0e   : > { %v2045_v30 = vrot.slane %v2038_v16, %v4187_v54  ;;  %v2053_v44 = vrot.slane %v3353_v17, %v4187_v54  ;;  %v2054_v46 = vcombine.low %v2029_v34, %v2037_v35 }
 0xd10   : > { %v2062_v39 = vcombine.low %v2045_v30, %v2053_v44  ;;  %v2061_v53 = vrot.slane %v2054_v46, %v4191_v58 }
 0xd12   : > { %v2069_v51 = vrot.slane %v2062_v39, %v4191_v58 }
 0xd14   : > { %v2070_v55 = vcombine.low %v2061_v53, %v2069_v51  ;;  %v2071_v59 = vcombine.high %v2061_v53, %v2069_v51 }
 0xd76   : > { %v2075_v7 = vpop.permute.xlu1 %2074 }
 0xd77   : > { %v2093_v9 = vcombine.high %v2075_v7, %v3959_v20  ;;  %v2100_v56 = vrot.slane %v2075_v7, %v4187_v54 }
 0xd79   : > { %v2107_v13 = vrot.slane %v2093_v9, %v4187_v54  ;;  %v2108_v14 = vcombine.low %v2085_v8, %v2100_v56  ;;  %v2109_v15 = vcombine.high %v2085_v8, %v2100_v56 }
 0xd7b   : > { %v2116_v19 = vrot.slane %v2108_v14, %v4191_v58  ;;  %v2123_v21 = vrot.slane %v2109_v15, %v4191_v58  ;;  %v2124_v22 = vcombine.low %v2092_v12, %v2107_v13  ;;  %v2125_v23 = vcombine.high %v2092_v12, %v2107_v13 }
 0xd7d   : > { %v2132_v26 = vrot.slane %v2124_v22, %v4191_v58  ;;  %v2139_v27 = vrot.slane %v2125_v23, %v4191_v58  ;;  %v2144_v28 = vcombine.low %v2116_v19, %v2123_v21  ;;  %v3354_v29 = vcombine.high %v2116_v19, %v2123_v21 }
 0xd7e   : > { %v2198_v19 = vcombine.high %v1950_v61, %v3959_v20  ;;  %v2205_v22 = vrot.slane %v1950_v61, %v4187_v54 }
 0xd7f   : > { %v2151_v31 = vrot.slane %v2144_v28, %v4187_v54  ;;  %v2159_v48 = vrot.slane %v3354_v29, %v4187_v54  ;;  %v2160_v32 = vcombine.low %v2132_v26, %v2139_v27  ;;  %v3355_v33 = vcombine.high %v2132_v26, %v2139_v27 }
 0xd80   : > { %v2212_v25 = vrot.slane %v2198_v19, %v4187_v54 }
 0xd81   : > { %v2167_v36 = vrot.slane %v2160_v32, %v4187_v54  ;;  %v2175_v37 = vrot.slane %v3355_v33, %v4187_v54  ;;  %v2176_v38 = vcombine.low %v2151_v31, %v2159_v48 }
 0xd83   : > { %v2184_v40 = vcombine.low %v2167_v36, %v2175_v37  ;;  %v2183_v47 = vrot.slane %v2176_v38, %v4191_v58 }
 0xd85   : > { %v2191_v49 = vrot.slane %v2184_v40, %v4191_v58 }
 0xd87   : > { %v2192_v52 = vcombine.low %v2183_v47, %v2191_v49  ;;  %v2193_v57 = vcombine.high %v2183_v47, %v2191_v49 }
 0xd89   : > { %3593 = vmatpush3.xpose.msk.msra.mxu1 %vm1018_vm2, %v2192_v52 }
 0xd8a   : > { %3597 = vmatprep.subr.mxu1 %v3959_v20 }
 0xd8c   : > { %3595 = vmatmul.mubr.msk.f32.vlgmr.msra.gmra.mrb[12].mxu1 %vm1018_vm2, %v2070_v55 }
 0xd8d   : > { %3598 = vmatpush3.xpose.msk.msra.mxu1 %vm1018_vm2, %v2193_v57  ;;  %3599 = vmatprep.mubr.msk.f32.mxu1 %vm3964_vm1, %v3959_v20 }
 0xd8e   : > { %3602 = vmatprep.subr.mxu1 %v3959_v20 }
 0xd90   : > { %3600 = vmatmul.mubr.msk.f32.vlgmr.msra.gmra.mrb[14].mxu1 %vm1018_vm2, %v2071_v59 }
 0xd91   : > { %3604 = vmatprep.mubr.msk.f32.mxu1 %vm3964_vm1, %v3959_v20 }
 0xe5f   : > { %v2386_v60 = vpop.f32.mrb[12].mxu1 }
 0xe60   : > { %v2466_v62 = vmul.f32 0.17677669, %v2386_v60  ;;  %v3596_v63 = vpop.f32.mrb[13].mxu1  ;;  %v3366_v60 = vld [vmem:[%s4965_s5 + $0x40] sm:$0xff] }
 0xe61   : > { %v3368_v63 = vld [vmem:[%s4965_s5 + $0x50] sm:$0xff] }
 0xe62   : > { %v2468_v1 = vsel %vm522_vm3, %v2466_v62, -1e+30  ;;  %v3367_v62 = vld [vmem:[%s4965_s5 + $0x48] sm:$0xff] }
 0xe63   : > { %v2462_v2 = vpop.f32.mrb[14].mxu1  ;;  %v2470_v4 = vsel %vm1177_vm4, %v2468_v1, -inf }
 0xe64   : > { %v2467_v5 = vmul.f32 0.17677669, %v2462_v2  ;;  %2471 = vmax.xlane.f32.xlu1 %v2470_v4  ;;  %v3601_v6 = vpop.f32.mrb[15].mxu1  ;;  %v3369_v2 = vld [vmem:[%s4965_s5 + $0x58] sm:$0xff] }
 0xe65   : > { %v3746_v4 = vpack.c.bf16 %v3369_v2, %v3368_v63  ;;  %v3371_v6 = vld [vmem:[%s4965_s5 + $0x68] sm:$0xff]  ;;  %v3388_v2 = vld [vmem:[%s4969_s9 + $0xb8] sm:$0xff] }
 0xe66   : > { %v2469_v41 = vsel %vm522_vm3, %v2467_v5, -1e+30  ;;  %v3370_v5 = vld [vmem:[%s4965_s5 + $0x60] sm:$0xff] }
 0xe67   : > { %v2473_v7 = vsel %vm1177_vm4, %v2469_v41, -inf }
 0xe68   : > { %2474 = vmax.xlane.f32.xlu0 %v2473_v7  ;;  %v3372_v7 = vld [vmem:[%s4965_s5 + $0x70] sm:$0xff] }
 0xef1   : > { %v2472_v8 = vpop.xlane.xlu1 %2471 }
 0xef2   : > { %v2476_v9 = vsub.f32 %v2468_v1, %v2472_v8  ;;  %v3743_v1 = vpack.c.bf16 %v3367_v62, %v3366_v60  ;;  %v3373_v8 = vld [vmem:[%s4965_s5 + $0x78] sm:$0xff]  ;;  %v3381_v60 = vld [vmem:[%s4969_s9 + $0x80] sm:$0xff]  ;;  %v3383_v62 = vld [vmem:[%s4969_s9 + $0x90] sm:$0xff] }
 0xef3   : > { %v3756_v63 = vpack.c.bf16 %v3383_v62, %v3381_v60  ;;  %v3426_v60 = vld [vmem:[%s4971_s11 + $0x1d8] sm:$0xff] }
 0xef4   : > { %v2478_v56 = vmul.f32 1.442695, %v2476_v9  ;;  %3744 = vmatpush3.bf16.msra.mxu0 %v3743_v1  ;;  %v3752_v9 = vpack.c.bf16 %v3373_v8, %v3372_v7  ;;  %v3386_v1 = vld [vmem:[%s4969_s9 + $0xa8] sm:$0xff]  ;;  %v3392_v8 = vld [vmem:[%s4969_s9 + $0xd8] sm:$0xff] }
 0xef5   : > { %v2475_v10 = vpop.xlane.xlu0 %2474  ;;  %3745 = vmatprep.subr.bf16.mxu0 %v3965_v3  ;;  %v3390_v7 = vld [vmem:[%s4969_s9 + $0xc8] sm:$0xff] }
 0xef6   : > { %3879 = vpow2.f32 %v2478_v56  ;;  %v2477_v11 = vsub.f32 %v2469_v41, %v2475_v10  ;;  %v3749_v41 = vpack.c.bf16 %v3371_v6, %v3370_v5  ;;  %v3385_v5 = vld [vmem:[%s4969_s9 + $0xa0] sm:$0xff]  ;;  %v3387_v6 = vld [vmem:[%s4969_s9 + $0xb0] sm:$0xff] }
 0xef8   : > { %v2480_v12 = vmul.f32 1.442695, %v2477_v11  ;;  %3747 = vmatpush3.bf16.msra.mxu0 %v3746_v4  ;;  %v3758_v4 = vpack.c.bf16 %v3388_v2, %v3386_v1  ;;  %v3409_v1 = vld [vmem:[%s4971_s11 + $0x150] sm:$0xff]  ;;  %v3410_v2 = vld [vmem:[%s4971_s11 + $0x158] sm:$0xff] }
 0xef9   : > { %3748 = vmatprep.subr.bf16.mxu0 %v3965_v3 }
 0xefa   : > { %3881 = vpow2.f32 %v2480_v12 }
 0xefc   : > { %3750 = vmatpush3.bf16.msra.mxu0 %v3749_v41  ;;  %v3760_v41 = vpack.c.bf16 %v3387_v6, %v3385_v5  ;;  %v3428_v5 = vld [vmem:[%s4971_s11 + $0x1e8] sm:$0xff]  ;;  %v3792_v6 = vpack.c.bf16 %v3410_v2, %v3409_v1 }
 0xefd   : > { %3751 = vmatprep.subr.bf16.mxu0 %v3965_v3 }
 0xf00   : > { %v3880_v13 = vpop.eup %3879  ;;  %3753 = vmatpush3.bf16.msra.mxu0 %v3752_v9  ;;  %v3762_v9 = vpack.c.bf16 %v3392_v8, %v3390_v7  ;;  %v3411_v7 = vld [vmem:[%s4971_s11 + $0x160] sm:$0xff]  ;;  %v3412_v8 = vld [vmem:[%s4971_s11 + $0x168] sm:$0xff] }
 0xf01   : > { %v2482_v14 = vsel %vm1177_vm4, %v3880_v13, 0.0 }
 0xf02   : > { %2483 = vadd.xlane.f32.xlu0 %v2482_v14 }
 0xf04   : > { %v3882_v15 = vpop.eup %3881 }
 0xf05   : > { %v2485_v16 = vsel %vm1177_vm4, %v3882_v15, 0.0 }
 0xf06   : > { %2486 = vadd.xlane.f32.xlu1 %v2485_v16 }
 0xf18   : > { %2195 = vrot.lane.b32.xlu0 %v1950_v61, %s4997_s30  ;;  %s3899_s30 = sshll.u32 %s3967_s25, 4  ;;  %s3900_s30 = int_to_ptr.vmem [resolvable:$false] %s3899_s30 }
 0xf19   : > { %s3901_s27 = scalar_lea.vmem %s3900_s30, 256  ;;  %p3902_p0 = scmp.lt.s32.totalorder %s4915_s19, %s3900_s30 }
 0xf1a   : > { %p3903_p1 = scmp.lt.s32.totalorder %s3901_s27, %s3895_s18 }
 0xf1c   : > { %p3904_p2 = por %p3903_p1, %p3902_p0 }
 0xf1e   : > { %p3905_p3 = pnand %p3904_p2, %p3898_p13 }
 0xf8f   : > { %v2484_v17 = vpop.xlane.xlu0 %2483 }
 0xf90   : > { %3883 = vrcp.f32 %v2484_v17 }
 0xf93   : > { %v2196_v21 = vpop.permute.xlu0 %2195  ;;  %v2487_v50 = vpop.xlane.xlu1 %2486 }
 0xf94   : > { %v2213_v23 = vcombine.high %v2196_v21, %v3959_v20  ;;  %v2220_v24 = vrot.slane %v2196_v21, %v4187_v54  ;;  %3885 = vrcp.f32 %v2487_v50 }
 0xf96   : > { %v2227_v26 = vrot.slane %v2213_v23, %v4187_v54  ;;  %v2228_v27 = vcombine.low %v2205_v22, %v2220_v24  ;;  %v2229_v45 = vcombine.high %v2205_v22, %v2220_v24 }
 0xf98   : > { %v2236_v28 = vrot.slane %v2228_v27, %v4191_v58  ;;  %v2243_v29 = vrot.slane %v2229_v45, %v4191_v58  ;;  %v2244_v30 = vcombine.low %v2212_v25, %v2227_v26  ;;  %v2245_v44 = vcombine.high %v2212_v25, %v2227_v26 }
 0xf9a   : > { %v2252_v31 = vrot.slane %v2244_v30, %v4191_v58  ;;  %v2259_v48 = vrot.slane %v2245_v44, %v4191_v58  ;;  %v2264_v32 = vcombine.low %v2236_v28, %v2243_v29  ;;  %v3356_v33 = vcombine.high %v2236_v28, %v2243_v29  ;;  %v3884_v47 = vpop.eup %3883 }
 0xf9b   : > { %v2490_v55 = vmul.f32 %v3884_v47, %v3880_v13 }
 0xf9c   : > { %v2271_v34 = vrot.slane %v2264_v32, %v4187_v54  ;;  %v2279_v35 = vrot.slane %v3356_v33, %v4187_v54  ;;  %v2280_v36 = vcombine.low %v2252_v31, %v2259_v48  ;;  %v3357_v37 = vcombine.high %v2252_v31, %v2259_v48 }
 0xf9e   : > { %v2287_v38 = vrot.slane %v2280_v36, %v4187_v54  ;;  %v2295_v39 = vrot.slane %v3357_v37, %v4187_v54  ;;  %v2296_v40 = vcombine.low %v2271_v34, %v2279_v35  ;;  %v3886_v53 = vpop.eup %3885 }
 0xf9f   : > { %v2491_v59 = vmul.f32 %v3886_v53, %v3882_v15 }
 0xfa0   : > { %v2304_v46 = vcombine.low %v2287_v38, %v2295_v39  ;;  %v2303_v49 = vrot.slane %v2296_v40, %v4191_v58 }
 0xfa2   : > { %v2311_v51 = vrot.slane %v2304_v46, %v4191_v58 }
 0xfa4   : > { %v2312_v52 = vcombine.low %v2303_v49, %v2311_v51  ;;  %v2313_v57 = vcombine.high %v2303_v49, %v2311_v51 }
 0xfa6   : > { %3603 = vmatpush3.msra.mxu1 %v2312_v52 }
 0xfa7   : > { %3605 = vmatmul.mubr.msk.f32.vlgmr.msra.gmra.mrb[16].mxu1 %vm1177_vm4, %v2490_v55  ;;  %3607 = vmatprep.subr.mxu1 %v3959_v20 }
 0xfa8   : > { %3608 = vmatpush3.msra.mxu1 %v2313_v57  ;;  %3609 = vmatprep.mubr.msk.f32.mxu1 %vm3964_vm1, %v3959_v20  ;;  %v3382_v57 = vld [vmem:[%s4969_s9 + $0x88] sm:$0xff] }
 0xfab   : > { %3610 = vmatmul.mubr.msk.f32.vlgmr.msra.gmra.mrb[18].mxu1 %vm1177_vm4, %v2491_v59 }
 0xfac   : > { %2979 = vmatprep.mubr.f32.mxu1 %v3959_v20 }
0x107a   : > { %v2561_v56 = vpop.f32.mrb[16].mxu1 }
0x107b   : > { %v3606_v10 = vpop.f32.mrb[17].mxu1  ;;  %v2638_v11 = vcombine.high %v2561_v56, %v3959_v20  ;;  %v2645_v13 = vrot.slane %v2561_v56, %v4187_v54  ;;  %v3389_v56 = vld [vmem:[%s4969_s9 + $0xc0] sm:$0xff] }
0x107c   : > { %v3391_v10 = vld [vmem:[%s4969_s9 + $0xd0] sm:$0xff] }
0x107d   : > { %v2652_v42 = vrot.slane %v2638_v11, %v4187_v54  ;;  %v3764_v11 = vpack.c.bf16 %v3391_v10, %v3389_v56  ;;  %v3430_v56 = vld [vmem:[%s4971_s11 + $0x1f8] sm:$0xff]  ;;  %v3796_v10 = vpack.c.bf16 %v3412_v8, %v3411_v7  ;;  %v3434_v7 = vld [vmem:[%s4974_s14] ss:$0 sm:$0xff] }
0x107e   : > { %v2634_v12 = vpop.f32.mrb[18].mxu1 }
0x107f   : > { %v2653_v14 = vcombine.high %v2634_v12, %v3959_v20  ;;  %v2660_v15 = vrot.slane %v2634_v12, %v4187_v54  ;;  %v3611_v16 = vpop.f32.mrb[19].mxu1  ;;  %v3394_v12 = vld [vmem:[%s4969_s9 + $0xe8] sm:$0xff] }
0x1080   : > { %v3395_v16 = vld [vmem:[%s4969_s9 + $0xf0] sm:$0xff] }
0x1081   : > { %v2667_v61 = vrot.slane %v2653_v14, %v4187_v54  ;;  %v2668_v17 = vcombine.low %v2645_v13, %v2660_v15  ;;  %v2669_v19 = vcombine.high %v2645_v13, %v2660_v15  ;;  %v3396_v13 = vld [vmem:[%s4969_s9 + $0xf8] sm:$0xff]  ;;  %v3393_v14 = vld [vmem:[%s4969_s9 + $0xe0] sm:$0xff] }
0x1082   : > { %v3766_v15 = vpack.c.bf16 %v3396_v13, %v3394_v12  ;;  %v3413_v12 = vld [vmem:[%s4971_s11 + $0x170] sm:$0xff]  ;;  %v3414_v13 = vld [vmem:[%s4971_s11 + $0x178] sm:$0xff] }
0x1083   : > { %v2676_v21 = vrot.slane %v2668_v17, %v4191_v58  ;;  %v2683_v22 = vrot.slane %v2669_v19, %v4191_v58  ;;  %v2684_v23 = vcombine.low %v2652_v42, %v2667_v61  ;;  %v2685_v24 = vcombine.high %v2652_v42, %v2667_v61  ;;  %v3415_v61 = vld [vmem:[%s4971_s11 + $0x180] sm:$0xff]  ;;  %v3416_v17 = vld [vmem:[%s4971_s11 + $0x188] sm:$0xff] }
0x1084   : > { %v3768_v42 = vpack.c.bf16 %v3395_v16, %v3393_v14  ;;  %v3399_v19 = vld [vmem:[%s4971_s11 + $0x100] sm:$0xff]  ;;  %v3800_v14 = vpack.c.bf16 %v3414_v13, %v3413_v12 }
0x1085   : > { %v2692_v25 = vrot.slane %v2684_v23, %v4191_v58  ;;  %v2699_v26 = vrot.slane %v2685_v24, %v4191_v58  ;;  %v2704_v27 = vcombine.low %v2676_v21, %v2683_v22  ;;  %v3364_v45 = vcombine.high %v2676_v21, %v2683_v22  ;;  %v3400_v22 = vld [vmem:[%s4971_s11 + $0x108] sm:$0xff] }
0x1086   : > { %v3770_v21 = vpack.c.bf16 %v3416_v17, %v3415_v61  ;;  %v3772_v23 = vpack.c.bf16 %v3400_v22, %v3399_v19 }
0x1087   : > { %v2711_v50 = vrot.slane %v2704_v27, %v4187_v54  ;;  %v2719_v28 = vrot.slane %v3364_v45, %v4187_v54  ;;  %v2720_v29 = vcombine.low %v2692_v25, %v2699_v26  ;;  %v3365_v30 = vcombine.high %v2692_v25, %v2699_v26  ;;  %v3379_v45 = vld [vmem:[%s4967_s7 + $0x1] ss:$0 sm:$0xff] }
0x1088   : > { %3771 = vmatprep.subr.bf16.mxu0 %v3770_v21 }
0x1089   : > { %v2727_v44 = vrot.slane %v2720_v29, %v4187_v54  ;;  %v2735_v31 = vrot.slane %v3365_v30, %v4187_v54  ;;  %v2736_v48 = vcombine.low %v2711_v50, %v2719_v28  ;;  %v3376_v54 = vld [vmem:[%s4966_s6 + $0x1] ss:$0 sm:$0xff] }
0x108a   : > { %v3380_v28 = vld [vmem:[%s4968_s8 + $0x1] ss:$0 sm:$0xff] }
0x108b   : > { %v2744_v32 = vcombine.low %v2727_v44, %v2735_v31  ;;  %v2743_v33 = vrot.slane %v2736_v48, %v4191_v58  ;;  %v3417_v44 = vld [vmem:[%s4971_s11 + $0x190] sm:$0xff]  ;;  %v3418_v31 = vld [vmem:[%s4971_s11 + $0x198] sm:$0xff] }
0x108c   : > { %v3774_v48 = vpack.c.bf16 %v3418_v31, %v3417_v44 }
0x108d   : > { %v2751_v34 = vrot.slane %v2744_v32, %v4191_v58  ;;  %v3401_v32 = vld [vmem:[%s4971_s11 + $0x110] sm:$0xff] }
0x108f   : > { %v2753_v35 = vcombine.high %v2743_v33, %v2751_v34  ;;  %v2752_v36 = vcombine.low %v2743_v33, %v2751_v34  ;;  %v3402_v33 = vld [vmem:[%s4971_s11 + $0x118] sm:$0xff] }
0x1090   : > { %v3776_v34 = vpack.c.bf16 %v3402_v33, %v3401_v32 }
0x1091   : > { %2755 = vrot.lane.b32.xlu1 %v2753_v35, %s4998_s26  ;;  %v3420_v35 = vld [vmem:[%s4971_s11 + $0x1a8] sm:$0xff] }
0x1103   : > { %v2756_v37 = vpop.permute.xlu1 %2755 }
0x1104   : > { %v2758_v38 = vsel %vm1018_vm2, %v2752_v36, %v2756_v37  ;;  %v3403_v37 = vld [vmem:[%s4971_s11 + $0x120] sm:$0xff] }
0x1105   : > { %3629 = vmatmul.mubr.msk.f32.vlgmr.msra.gmra.mrb[6].mxu0 %vm525_vm0, %v2758_v38  ;;  %v3404_v38 = vld [vmem:[%s4971_s11 + $0x128] sm:$0xff] }
0x1106   : > { %3773 = vmatpush3.bf16.msra.mxu0 %v3772_v23 }
0x1107   : > { %3775 = vmatprep.subr.bf16.mxu0 %v3774_v48 }
0x110a   : > { %3777 = vmatpush3.bf16.msra.mxu0 %v3776_v34 }
0x11d8   : > { %v2837_v39 = vpop.f32.mrb[6].mxu0 }
0x11d9   : > { %v2841_v40 = vadd.f32 %v2837_v39, %v4504_v0  ;;  %v3630_v46 = vpop.f32.mrb[7].mxu0  ;;  %v3384_v0 = vld [vmem:[%s4969_s9 + $0x98] sm:$0xff]  ;;  %v3780_v39 = vpack.c.bf16 %v3404_v38, %v3403_v37 }
0x11da   : > { %v3754_v59 = vpack.c.bf16 %v3384_v0, %v3382_v57  ;;  %v3408_v57 = vld [vmem:[%s4971_s11 + $0x148] sm:$0xff] }
0x11db   : > { %v4708_v47 = vadd.f32 %v3376_v54, %v2841_v40  ;;  %v3421_v54 = vld [vmem:[%s4971_s11 + $0x1b0] sm:$0xff]  ;;  %v3422_v40 = vld [vmem:[%s4971_s11 + $0x1b8] sm:$0xff] }
0x11dc   : > { %3755 = vmatprep.subr.bf16.mxu1 %v3754_v59  ;;  %v3782_v46 = vpack.c.bf16 %v3422_v40, %v3421_v54  ;;  %v3425_v59 = vld [vmem:[%s4971_s11 + $0x1d0] sm:$0xff] }
0x11dd   : > { %v2855_v58 = vsel %vm525_vm0, %v4708_v47, 0.0  ;;  %3757 = vmatpush1.bf16.msra.mxu1 %v3756_v63  ;;  %v3790_v63 = vpack.c.bf16 %v3426_v60, %v3425_v59  ;;  %v3151_v59 = vld [vmem:[%s4975_s15 + $0x28] sm:$0xff] }
0x11de   : > { %2856 = vadd.xlane.f32.xlu1 %v2855_v58  ;;  %3759 = vmatprep.subr.bf16.mxu1 %v3758_v4  ;;  %v3405_v58 = vld [vmem:[%s4971_s11 + $0x130] sm:$0xff]  ;;  %v3427_v4 = vld [vmem:[%s4971_s11 + $0x1e0] sm:$0xff] }
0x11e1   : > { %3761 = vmatpush1.bf16.msra.mxu1 %v3760_v41  ;;  %v3794_v41 = vpack.c.bf16 %v3428_v5, %v3427_v4 }
0x11e2   : > { %3763 = vmatprep.subr.bf16.mxu1 %v3762_v9  ;;  %v3429_v9 = vld [vmem:[%s4971_s11 + $0x1f0] sm:$0xff] }
0x11e5   : > { %3765 = vmatpush1.bf16.msra.mxu1 %v3764_v11  ;;  %v3798_v11 = vpack.c.bf16 %v3430_v56, %v3429_v9 }
0x11e6   : > { %3767 = vmatprep.subr.bf16.mxu1 %v3766_v15  ;;  %v3397_v15 = vld [vmem:[%s4970_s10 + $0x2] sm:$0x3] }
0x11e7   : > { %v2905_v16 = vrot.slane %v3397_v15, %v4173_v43 }
0x11e9   : > { %3769 = vmatpush1.bf16.msra.mxu1 %v3768_v42  ;;  %v2909_v42 = vrot.slane %v3397_v15, %v4255_v18 }
0x11ea   : > { %3802 = vmatprep.subr.bf16.mxu1 %v3965_v3 }
0x126b   : > { %v2857_v49 = vpop.xlane.xlu1 %2856 }
0x126c   : > { %v2858_v51 = vmul.f32 0.015625, %v2857_v49  ;;  %v3406_v49 = vld [vmem:[%s4971_s11 + $0x138] sm:$0xff] }
0x126e   : > { %v2859_v52 = vsub.f32 %v4708_v47, %v2858_v51  ;;  %v3423_v51 = vld [vmem:[%s4971_s11 + $0x1c0] sm:$0xff] }
0x1270   : > { %v2860_v53 = vmul.f32 %v2859_v52, %v2859_v52 }
0x1272   : > { %v2861_v55 = vsel %vm525_vm0, %v2860_v53, 0.0  ;;  %v3424_v53 = vld [vmem:[%s4971_s11 + $0x1c8] sm:$0xff] }
0x1273   : > { %2862 = vadd.xlane.f32.xlu0 %v2861_v55  ;;  %v3407_v55 = vld [vmem:[%s4971_s11 + $0x140] sm:$0xff]  ;;  %v3786_v0 = vpack.c.bf16 %v3424_v53, %v3423_v51  ;;  %v3148_v53 = vld [vmem:[%s4975_s15 + $0x10] sm:$0xff] }
0x1274   : > { %v3788_v62 = vpack.c.bf16 %v3408_v57, %v3407_v55  ;;  %v3146_v51 = vld [vmem:[%s4975_s15] sm:$0xff]  ;;  %v3149_v55 = vld [vmem:[%s4975_s15 + $0x18] sm:$0xff] }
0x1275   : > { %v3806_v57 = vpack.c.bf16 %v3149_v55, %v3148_v53 }
0x1300   : > { %v2863_v24 = vpop.xlane.xlu0 %2862 }
0x1301   : > { %v2864_v25 = vmul.f32 0.015625, %v2863_v24 }
0x1303   : > { %v2865_v26 = vadd.f32 1e-05, %v2864_v25 }
0x1305   : > { %3887 = vrsqrt.f32 %v2865_v26 }
0x130f   : > { %v3888_v27 = vpop.eup %3887 }
0x1310   : > { %v2867_v50 = vmul.f32 %v3888_v27, %v2859_v52  ;;  %v3784_v52 = vpack.c.bf16 %v3406_v49, %v3405_v58 }
0x1312   : > { %v2874_v29 = vmul.f32 %v3379_v45, %v2867_v50 }
0x1314   : > { %v2881_v30 = vadd.f32 %v3380_v28, %v2874_v29 }
0x1316   : > { %3398 = vmatmul.mubr.msk.f32.vlgmr.msra.gmra.mrb[20].mxu1 %vm525_vm0, %v2881_v30 }
0x1317   : > { %3647 = vmatprep.mubr.msk.f32.mxu1 %vm3964_vm1, %v3959_v20  ;;  %v3419_v20 = vld [vmem:[%s4971_s11 + $0x1a0] sm:$0xff] }
0x1318   : > { %v3778_v36 = vpack.c.bf16 %v3420_v35, %v3419_v20 }
0x131a   : > { %3779 = vmatprep.subr.bf16.mxu0 %v3778_v36  ;;  %v3432_v36 = vld [vmem:[%s4972_s12 + $0x1] ss:$0 sm:$0xff] }
0x131b   : > { %3781 = vmatpush3.bf16.msra.mxu0 %v3780_v39 }
0x131c   : > { %3783 = vmatprep.subr.bf16.mxu0 %v3782_v46 }
0x131f   : > { %3785 = vmatpush3.bf16.msra.mxu0 %v3784_v52  ;;  %v3147_v52 = vld [vmem:[%s4975_s15 + $0x8] sm:$0xff] }
0x1320   : > { %3787 = vmatprep.subr.bf16.mxu0 %v3786_v0  ;;  %v3150_v0 = vld [vmem:[%s4975_s15 + $0x20] sm:$0xff] }
0x1321   : > { %v3809_v60 = vpack.c.bf16 %v3151_v59, %v3150_v0 }
0x1323   : > { %3789 = vmatpush3.bf16.msra.mxu0 %v3788_v62  ;;  %v3152_v62 = vld [vmem:[%s4975_s15 + $0x30] sm:$0xff] }
0x1324   : > { %3791 = vmatprep.subr.bf16.mxu0 %v3790_v63  ;;  %v3153_v63 = vld [vmem:[%s4975_s15 + $0x38] sm:$0xff] }
0x1325   : > { %v3812_v1 = vpack.c.bf16 %v3153_v63, %v3152_v62 }
0x1327   : > { %3793 = vmatpush3.bf16.msra.mxu0 %v3792_v6 }
0x1328   : > { %3795 = vmatprep.subr.bf16.mxu0 %v3794_v41 }
0x132b   : > { %3797 = vmatpush3.bf16.msra.mxu0 %v3796_v10 }
0x132c   : > { %3799 = vmatprep.subr.bf16.mxu0 %v3798_v11 }
0x132f   : > { %3801 = vmatpush3.bf16.msra.mxu0 %v3800_v14 }
0x13e9   : > { %v2981_v61 = vpop.f32.mrb[20].mxu1 }
0x13ea   : > { %v2982_v17 = vadd.f32 %v2981_v61, %v2905_v16  ;;  %v2983_v19 = vpop.f32.mrb[21].mxu1 }
0x13eb   : > { %v2984_v21 = vadd.f32 %v2983_v19, %v2909_v42 }
0x13ec   : > { %v2988_v22 = vmul.f32 0.044715, %v2982_v17  ;;  %v2986_v48 = vmul.f32 0.5, %v2982_v17 }
0x13ed   : > { %v2989_v23 = vmul.f32 0.044715, %v2984_v21  ;;  %v2987_v18 = vmul.f32 0.5, %v2984_v21 }
0x13ee   : > { %v2990_v24 = vmul.f32 %v2988_v22, %v2982_v17 }
0x13ef   : > { %v2991_v25 = vmul.f32 %v2989_v23, %v2984_v21 }
0x13f0   : > { %v2992_v26 = vmul.f32 %v2990_v24, %v2982_v17 }
0x13f1   : > { %v2993_v27 = vmul.f32 %v2991_v25, %v2984_v21 }
0x13f2   : > { %v2994_v45 = vadd.f32 %v2992_v26, %v2982_v17 }
0x13f3   : > { %v2995_v50 = vadd.f32 %v2993_v27, %v2984_v21 }
0x13f4   : > { %v2996_v28 = vmul.f32 0.7978846, %v2994_v45 }
0x13f5   : > { %v2997_v29 = vmul.f32 0.7978846, %v2995_v50 }
0x13f6   : > { %3889 = vtanh.f32 %v2996_v28 }
0x13f7   : > { %3891 = vtanh.f32 %v2997_v29 }
0x1400   : > { %v3890_v30 = vpop.eup %3889 }
0x1401   : > { %v3892_v43 = vpop.eup %3891  ;;  %v3000_v44 = vadd.f32 1.0, %v3890_v30 }
0x1402   : > { %v3001_v31 = vadd.f32 1.0, %v3892_v43 }
0x1403   : > { %v3002_v33 = vmul.f32 %v3000_v44, %v2986_v48 }
0x1404   : > { %v3003_v32 = vmul.f32 %v3001_v31, %v2987_v18 }
0x1406   : > { %3101 = vmatprep.mubr.f32.mxu0 %v3003_v32 }
0x1407   : > { %3102 = vmatmul.mubr.f32.vlgmr.msra.gmra.mrb[8].mxu0 %v3002_v33 }
0x14da   : > { %v3541_v34 = vpop.f32.mrb[8].mxu0 }
0x14db   : > { %v3542_v20 = vpop.f32.mrb[9].mxu0 }
0x14dc   : > { %v3543_v35 = vadd.f32 %v3542_v20, %v3541_v34 }
0x14de   : > { %v3107_v37 = vadd.f32 %v3543_v35, %v4708_v47  ;;  %v3803_v47 = vpack.c.bf16 %v3147_v52, %v3146_v51 }
0x14e0   : > { %v3116_v38 = vadd.f32 %v3432_v36, %v3107_v37  ;;  %3804 = vmatpush3.bf16.msra.mxu1 %v3803_v47 }
0x14e1   : > { %3805 = vmatprep.subr.bf16.mxu1 %v3965_v3 }
0x14e2   : > { %v3119_v39 = vsel %vm525_vm0, %v3116_v38, 0.0 }
0x14e3   : > { %3120 = vadd.xlane.f32.xlu0 %v3119_v39 }
0x14e4   : > { %3807 = vmatpush3.bf16.msra.mxu1 %v3806_v57 }
0x14e5   : > { %3808 = vmatprep.subr.bf16.mxu1 %v3965_v3 }
0x14e8   : > { %3810 = vmatpush3.bf16.msra.mxu1 %v3809_v60 }
0x14e9   : > { %3811 = vmatprep.subr.bf16.mxu1 %v3965_v3  ;;  %v3433_v3 = vld [vmem:[%s4973_s13] ss:$0 sm:$0xff] }
0x14ec   : > { %3813 = vmatpush3.bf16.msra.mxu1 %v3812_v1 }
0x1570   : > { %v3121_v54 = vpop.xlane.xlu0 %3120 }
0x1571   : > { %v3122_v40 = vmul.f32 0.015625, %v3121_v54 }
0x1573   : > { %v3123_v46 = vsub.f32 %v3116_v38, %v3122_v40 }
0x1575   : > { %v3124_v58 = vmul.f32 %v3123_v46, %v3123_v46 }
0x1577   : > { %v3125_v49 = vsel %vm525_vm0, %v3124_v58, 0.0 }
0x1578   : > { %3126 = vadd.xlane.f32.xlu1 %v3125_v49 }
0x1605   : > { %v3127_v2 = vpop.xlane.xlu1 %3126 }
0x1606   : > { %v3128_v4 = vmul.f32 0.015625, %v3127_v2 }
0x1608   : > { %v3129_v5 = vadd.f32 1e-05, %v3128_v4 }
0x160a   : > { %3893 = vrsqrt.f32 %v3129_v5 }
0x1614   : > { %v3894_v6 = vpop.eup %3893 }
0x1615   : > { %v3131_v41 = vmul.f32 %v3894_v6, %v3123_v46 }
0x1617   : > { %v3138_v8 = vmul.f32 %v3433_v3, %v3131_v41 }
0x1619   : > { %v3145_v9 = vadd.f32 %v3434_v7, %v3138_v8 }
0x161b   : > { %3648 = vmatmul.mubr.msk.f32.vlgmr.msra.gmra.mrb[22].mxu1 %vm525_vm0, %v3145_v9 }
0x16ee   : > { %v3223_v56 = vpop.f32.mrb[22].mxu1 }
0x16ef   : > { %3227 = vst [vmem:[%s512_s17] sm:$0xff] %v3223_v56  ;;  %v3649_v10 = vpop.f32.mrb[23].mxu1 }
0x16f0   : > { %3908 = shalt.err (!%p3905_p3)
}
0x16f1   : > { %s3909_s20 = scalar_lea.hbm %s4920_s23, 128  ;;  %s3913_s26 = scalar_lea.hbm %s4976_s16, 256 }
0x16f2   : > { %p3910_p4 = scmp.ne.s32.totalorder %s4920_s23, %s3909_s20  ;;  %p3914_p9 = scmp.lt.u32.totalorder %s4920_s23, %s4976_s16 }
0x16f3   : > { %p3915_p10 = scmp.lt.u32.totalorder %s3913_s26, %s3909_s20  ;;  %p3917_p12 = scmp.lt.u32.totalorder %s3909_s20, %s4920_s23 }
0x16f4   : > { %p3911_p7 = pnand %p3910_p4, %p4091_p5 }
0x16f5   : > { %p3916_p11 = por %p3915_p10, %p3914_p9 }
0x16f6   : > { %p3912_p8 = pneg %p3911_p7 }
0x16f7   : > { %p3918_p13 = por %p3917_p12, %p3916_p11 }
0x16f9   : > { %p3919_p0 = pnand %p3918_p13, %p3912_p8 }
0x16fb   : > { %3922 = shalt.err (!%p3919_p0)
}
0x16fc   : > { %3814 = dma.vmem_to_hbm [thread:$0]  (%p4091_p5), %s4915_s19, 128, %s4920_s23, %s3229_s29  }
0x16fd PF: > { %s4999_s18 = sld [smem:[#allocation5_spill]]  ;;  %p3820_p1 = scmp.ge.s32.totalorder %s3957_s24, 2 }
0x16ff   : > { %p3817_p2 = pnand %p3820_p1, %p4095_p6 }
0x1703   : > { %s3254_s27 = sand.u32 1, %s4999_s18  }
0x1704   : > { %s3255_s17 = scalar_lea.sflag [#allocation3], %s3254_s27 }
0x1705   : > { %3940 = dma.done.wait (!%p3817_p2), %s3255_s17, 128  }
0x1706   : > { %3942 = vsyncadd (!%p3817_p2), %s3255_s17, 4294967168  ;;  %s5001_s24 = sld [smem:[#allocation7_spill]]  ;;  %s5002_s20 = sld [smem:[#allocation6_spill]] }
0x1707   : > { %s5003_s23 = sld [smem:[#allocation8_spill]]  ;;  %s5004_s21 = smov %s3949_s22 }
0x170c   : > { %p26_p3 = scmp.ge.s32.totalorder %s5001_s24, 4   ;;  %s5005_s22 = smov %s5002_s20 }
0x170e   :  { %28 = sbr.rel (!%p26_p3) target bundleno = 5 (0x5), region = 131 }
0x1715   :  { %3260 = vsyncpa [#allocation3], 1 }
0x1716   :  { %3262 = vsyncpa [#allocation3 + $0x1], 1 }

</bundles_post_ra>
